<compile_context>
chip_gen: v5e
topology: v5e:2x2
jax: 0.10.0
libtpu: 0.0.40
codegen_flags: <defaults>
</compile_context>

<pallas_src>
import functools

import jax
import jax.numpy as jnp
from jax import lax
from jax.experimental import pallas as pl
from jax.experimental.pallas import tpu as pltpu


# ----------------------------------------------------------------------------- #
# Fused per-layer kernel: attention + message + scatter-sum + W_h + GRU
# ----------------------------------------------------------------------------- #
def fused_layer_kernel(hs_ref, hr_ref, hqr_ref, obj_ref, h0_ref,
                       ws_ref, wr_ref, wqr_ref, b_attn_ref, w_alpha_ref,
                       b_alpha_ref, w_h_ref, w_ih_ref, w_hh_ref, b_ih_ref,
                       b_hh_ref, hid_out_ref, agg_ref, nid_ref):
    e = pl.program_id(0)                      # edge tile (reduction axis)
    d = agg_ref.shape[1]

    @pl.when(e == 0)
    def _init():
        agg_ref[...] = jnp.zeros_like(agg_ref)
        # node-id column cached once; padded obj entries are -1 and never match.
        nid_ref[...] = lax.broadcasted_iota(jnp.int32, nid_ref.shape, 0)

    hs = hs_ref[...]                                                  # (te, D) bf16
    hr = hr_ref[...]
    hqr = hqr_ref[...]

    # --- attention MLP: three small K=D matmuls against resident weights (f32 acc)
    s = (jnp.dot(hs, ws_ref[...], preferred_element_type=jnp.float32)
         + jnp.dot(hr, wr_ref[...], preferred_element_type=jnp.float32)
         + jnp.dot(hqr, wqr_ref[...], preferred_element_type=jnp.float32)
         + b_attn_ref[...])                                           # (te, A)
    s = jnp.maximum(s, 0.0)
    logit = jnp.sum(s * w_alpha_ref[...], axis=-1, keepdims=True) + b_alpha_ref[0, 0]
    alpha = jax.nn.sigmoid(logit)                                     # (te, 1)

    # --- alpha-weighted message (hsum computed in-kernel: one VPU add) ------------
    msg = (alpha * (hs.astype(jnp.float32)
                    + hr.astype(jnp.float32))).astype(jnp.bfloat16)   # (te, D)

    # --- scatter-sum: lane-major one-hot, no transpose ----------------------------
    onehot = (nid_ref[...] == obj_ref[...]).astype(jnp.bfloat16)      # (N_pad, te)
    agg_ref[...] += jnp.dot(onehot, msg,
                            preferred_element_type=jnp.float32)       # (N_pad, D)

    # --- finalize on the last edge tile: W_h + relu, single-step GRU gate ---------
    @pl.when(e == pl.num_programs(0) - 1)
    def _finalize():
        x = jnp.maximum(
            jnp.dot(agg_ref[...].astype(jnp.bfloat16), w_h_ref[...],
                    preferred_element_type=jnp.float32), 0.0)         # (N_pad, D)
        h = h0_ref[...]                                               # (N_pad, D)
        gi = jnp.dot(x.astype(jnp.bfloat16), w_ih_ref[...],
                     preferred_element_type=jnp.float32) + b_ih_ref[...]
        gh = jnp.dot(h.astype(jnp.bfloat16), w_hh_ref[...],
                     preferred_element_type=jnp.float32) + b_hh_ref[...]
        r = jax.nn.sigmoid(gi[:, :d] + gh[:, :d])
        z = jax.nn.sigmoid(gi[:, d:2 * d] + gh[:, d:2 * d])
        ng = jnp.tanh(gi[:, 2 * d:] + r * gh[:, 2 * d:])
        hid_out_ref[...] = (1.0 - z) * ng + z * h


def _round_up(x, m):
    return ((x + m - 1) // m) * m


def fused_layer_pallas(hs, hr, hqr, obj, h0, lw, gw, n_node, tile_e=1024):
    E, D = hs.shape
    A = lw["Ws"].shape[1]

    te = min(tile_e, _round_up(E, 128))       # lane-dense obj blocks (multiple of 128)
    E_pad = _round_up(E, te)
    N_pad = _round_up(n_node, 16)

    # VMEM budget (per feedback: size against the v7x 32 MiB scoped limit).
    vmem_est = (3 * te * D * 2 * 2            # hs/hr/hqr, double-buffered bf16
                + te * 4 * 2                  # obj int32
                + 3 * N_pad * D * 4           # h0 + hid_out + agg
                + N_pad * te * 4              # one-hot / compare intermediates
                + (3 * D * A + D * D + 2 * D * 3 * D) * 2
                + 4 * (2 * A + 2 * 3 * D))
    assert vmem_est < 24 * 1024 * 1024, (
        "resident accumulator tiling exceeds VMEM budget; use CSR-sorted edges "
        "with scalar-prefetched per-node-tile offsets instead")

    pad_e = E_pad - E
    hs_p = jnp.pad(hs, ((0, pad_e), (0, 0)))
    hr_p = jnp.pad(hr, ((0, pad_e), (0, 0)))
    hqr_p = jnp.pad(hqr, ((0, pad_e), (0, 0)))
    # Padded edges use obj = -1: node ids are always >= 0 so they never match, and
    # their padded hs/hr are zero so the message is zero anyway (double safety).
    obj_p = jnp.pad(obj.astype(jnp.int32), (0, pad_e),
                    constant_values=-1).reshape(1, E_pad)
    h0_p = jnp.pad(h0, ((0, N_pad - n_node), (0, 0)))

    grid = (E_pad // te,)

    def edge_spec():
        return pl.BlockSpec((te, D), lambda e: (e, 0))

    def const_spec(r, c):
        return pl.BlockSpec((r, c), lambda e: (0, 0))

    # NOTE(v6e): if DMA latency shows up with the slimmed edge stream, bump the
    # three edge BlockSpecs to pipeline_mode=pl.Buffered(3).
    # NOTE(v7x): a single "arbitrary" edge axis keeps one TC busy; for large graphs
    # split the node range across cores (core_map / parallel node axis over the
    # CSR-tiled scatter) so both TCs contribute without redundant edge traffic.
    hid = pl.pallas_call(
        fused_layer_kernel,
        out_shape=jax.ShapeDtypeStruct((N_pad, D), jnp.float32),
        grid_spec=pltpu.PrefetchScalarGridSpec(
            num_scalar_prefetch=0,
            grid=grid,
            in_specs=[
                edge_spec(),                                      # hs        bf16
                edge_spec(),                                      # hr        bf16
                edge_spec(),                                      # hqr       bf16
                pl.BlockSpec((1, te), lambda e: (0, e)),          # obj (lane-major)
                const_spec(N_pad, D),                             # h0 (resident)
                const_spec(D, A),                                 # Ws        bf16
                const_spec(D, A),                                 # Wr        bf16
                const_spec(D, A),                                 # Wqr       bf16
                const_spec(1, A),                                 # b_attn    f32
                const_spec(1, A),                                 # w_alpha   f32
                pl.BlockSpec((1, 1), lambda e: (0, 0),
                             memory_space=pltpu.MemorySpace.SMEM),  # b_alpha scalar
                const_spec(D, D),                                 # W_h       bf16
                const_spec(D, 3 * D),                             # w_ih      bf16
                const_spec(D, 3 * D),                             # w_hh      bf16
                const_spec(1, 3 * D),                             # b_ih      f32
                const_spec(1, 3 * D),                             # b_hh      f32
            ],
            out_specs=const_spec(N_pad, D),
            scratch_shapes=[pltpu.VMEM((N_pad, D), jnp.float32),   # agg accumulator
                            pltpu.VMEM((N_pad, 1), jnp.int32)],    # cached node ids
        ),
        compiler_params=pltpu.CompilerParams(
            dimension_semantics=("arbitrary",)),
        # h0_exp has no other consumer in the wrapper, so aliasing it with the
        # hidden output is safe and avoids a fresh HBM buffer per layer.
        input_output_aliases={4: 0},
    )(hs_p, hr_p, hqr_p, obj_p, h0_p,
      lw["Ws"], lw["Wr"], lw["Wqr"], lw["b_attn"], lw["w_alpha"], lw["b_alpha"],
      lw["W_h"], gw["w_ih"], gw["w_hh"], gw["b_ih"], gw["b_hh"])

    return hid[:n_node]


# ----------------------------------------------------------------------------- #
# RED_GNN_induc forward (glue: gathers, h0 index_copy, final score + scatter)
# ----------------------------------------------------------------------------- #
def red_gnn_induc_forward(subs, rels, prep, graph_layers, n_ent, hidden_dim):
    n = subs.shape[0]
    h0 = jnp.zeros((n, hidden_dim), jnp.float32)
    hidden = jnp.zeros((n, hidden_dim), jnp.float32)
    nodes = jnp.stack([jnp.arange(n, dtype=jnp.int32), subs], axis=1)

    for li, (layer_nodes, edges, old_idx) in enumerate(graph_layers):
        lw = prep["layers"][li]
        sub, rel, obj, r_idx = edges[:, 4], edges[:, 2], edges[:, 5], edges[:, 0]

        # TODO(synk): move these row gathers in-kernel (scalar-prefetched indices +
        # one-hot matmul against the resident rela_embed table) to cut per-edge HBM
        # traffic to D bytes + 2 ints; at D=32 the XLA gather is not the bottleneck.
        hs = hidden[sub].astype(jnp.bfloat16)
        hr = lw["rela_embed"][rel].astype(jnp.bfloat16)
        hqr = lw["rela_embed"][rels][r_idx].astype(jnp.bfloat16)

        n_node = layer_nodes.shape[0]
        # h0 = zeros(n_node, H).index_copy_(old_nodes_new_idx, h0)
        h0_exp = jnp.zeros((n_node, hidden_dim), jnp.float32).at[old_idx].set(h0)

        # dropout(p=0.0) -> identity; single-step GRU: output == new hidden state
        hidden = fused_layer_pallas(hs, hr, hqr, obj, h0_exp, lw, prep["gru"], n_node)
        h0 = hidden
        nodes = layer_nodes

    # Final scoring only once, after the last layer (tiny N x D x 1 matmul in XLA).
    scores = (hidden @ prep["W_final"])[:, 0]
    scores_all = jnp.zeros((n, n_ent), jnp.float32).at[
        nodes[:, 0], nodes[:, 1]].set(scores)
    return scores_all


# ----------------------------------------------------------------------------- #
# Pure-JAX f32 reference (mirrors the PyTorch forward) for correctness check
# ----------------------------------------------------------------------------- #
def red_gnn_induc_reference(subs, rels, params, graph_layers, n_ent, hidden_dim):
    n = subs.shape[0]
    D = hidden_dim
    h0 = jnp.zeros((n, D), jnp.float32)
    hidden = jnp.zeros((n, D), jnp.float32)
    nodes = jnp.stack([jnp.arange(n, dtype=jnp.int32), subs], axis=1)
    g = params["gru"]
    for li, (layer_nodes, edges, old_idx) in enumerate(graph_layers):
        lp = params["layers"][li]
        sub, rel, obj, r_idx = edges[:, 4], edges[:, 2], edges[:, 5], edges[:, 0]
        hs = hidden[sub]
        hr = lp["rela_embed"][rel]
        hqr = lp["rela_embed"][rels][r_idx]
        s = jnp.maximum(hs @ lp["Ws"] + hr @ lp["Wr"] + hqr @ lp["Wqr"] + lp["bqr"], 0.0)
        alpha = jax.nn.sigmoid(s @ lp["w_alpha"] + lp["b_alpha"][0])[:, None]
        msg = alpha * (hs + hr)
        n_node = layer_nodes.shape[0]
        agg = jnp.zeros((n_node, D), jnp.float32).at[obj].add(msg)
        hidden_new = jnp.maximum(agg @ lp["W_h"], 0.0)
        h0 = jnp.zeros((n_node, D), jnp.float32).at[old_idx].set(h0)
        gi = hidden_new @ g["w_ih"] + g["b_ih"]
        gh = h0 @ g["w_hh"] + g["b_hh"]
        r = jax.nn.sigmoid(gi[:, :D] + gh[:, :D])
        z = jax.nn.sigmoid(gi[:, D:2 * D] + gh[:, D:2 * D])
        ng = jnp.tanh(gi[:, 2 * D:] + r * gh[:, 2 * D:])
        h_new = (1.0 - z) * ng + z * h0
        hidden, h0, nodes = h_new, h_new, layer_nodes
    scores = (hidden @ params["W_final"])[:, 0]
    return jnp.zeros((n, n_ent), jnp.float32).at[nodes[:, 0], nodes[:, 1]].set(scores)


# ----------------------------------------------------------------------------- #
# Deterministic parameters, kernel-layout prep, synthetic graph
# ----------------------------------------------------------------------------- #
def make_params(key, n_layer, hidden_dim, attn_dim, n_rel):
    D, A = hidden_dim, attn_dim
    layers = []
    for _ in range(n_layer):
        keys = jax.random.split(key, 10)
        key = keys[-1]
        layers.append(dict(
            rela_embed=0.1 * jax.random.normal(keys[0], (2 * n_rel + 1, D), jnp.float32),
            Ws=0.1 * jax.random.normal(keys[1], (D, A), jnp.float32),
            Wr=0.1 * jax.random.normal(keys[2], (D, A), jnp.float32),
            Wqr=0.1 * jax.random.normal(keys[3], (D, A), jnp.float32),
            bqr=0.1 * jax.random.normal(keys[4], (A,), jnp.float32),
            w_alpha=0.1 * jax.random.normal(keys[5], (A,), jnp.float32),
            b_alpha=0.1 * jax.random.normal(keys[6], (1,), jnp.float32),
            W_h=0.1 * jax.random.normal(keys[7], (D, D), jnp.float32),
        ))
    kg = jax.random.split(key, 6)
    gru = dict(
        w_ih=0.1 * jax.random.normal(kg[0], (D, 3 * D), jnp.float32),
        w_hh=0.1 * jax.random.normal(kg[1], (D, 3 * D), jnp.float32),
        b_ih=0.1 * jax.random.normal(kg[2], (3 * D,), jnp.float32),
        b_hh=0.1 * jax.random.normal(kg[3], (3 * D,), jnp.float32),
    )
    w_final = 0.1 * jax.random.normal(kg[4], (D, 1), jnp.float32)
    return dict(layers=layers, gru=gru, W_final=w_final)


def prepare_params(params):
    """Cast weights into the kernel layout (bf16 MXU operands, f32 biases)."""
    D = params["W_final"].shape[0]
    A = params["layers"][0]["Ws"].shape[1]
    layers = []
    for lp in params["layers"]:
        layers.append(dict(
            rela_embed=lp["rela_embed"],                          # f32, gathered in wrapper
            Ws=lp["Ws"].astype(jnp.bfloat16),
            Wr=lp["Wr"].astype(jnp.bfloat16),
            Wqr=lp["Wqr"].astype(jnp.bfloat16),
            b_attn=lp["bqr"].reshape(1, A).astype(jnp.float32),
            w_alpha=lp["w_alpha"].reshape(1, A).astype(jnp.float32),
            b_alpha=lp["b_alpha"].reshape(1, 1).astype(jnp.float32),
            W_h=lp["W_h"].astype(jnp.bfloat16),
        ))
    g = params["gru"]
    gru = dict(
        w_ih=g["w_ih"].astype(jnp.bfloat16),
        w_hh=g["w_hh"].astype(jnp.bfloat16),
        b_ih=g["b_ih"].reshape(1, 3 * D).astype(jnp.float32),
        b_hh=g["b_hh"].reshape(1, 3 * D).astype(jnp.float32),
    )
    return dict(layers=layers, gru=gru, W_final=params["W_final"].astype(jnp.float32))


def make_synthetic_graph(key, n, n_rel, n_ent):
    """Stand-in for loader.get_neighbors: two layers of deterministic expansion."""
    # TODO(synk): the real neighbor sampler is data-dependent host code; here the
    # per-layer (nodes, edges, old_nodes_new_idx) tensors are fixed synthetically.
    k1, k2, k3, k4, k5, k6, k7, k8 = jax.random.split(key, 8)

    # layer 1: 8 nodes, 32 edges; sub indexes previous 2 nodes, obj indexes new 8
    n1, e1 = 8, 32
    nodes1 = jnp.stack([
        jnp.array([0, 0, 0, 0, 1, 1, 1, 1], jnp.int32),
        jnp.array([0, 2, 3, 4, 1, 5, 6, 7], jnp.int32)], axis=1)
    edges1 = jnp.stack([
        jax.random.randint(k1, (e1,), 0, n, jnp.int32),              # r_idx
        jnp.zeros((e1,), jnp.int32),                                  # unused
        jax.random.randint(k2, (e1,), 0, 2 * n_rel + 1, jnp.int32),   # rel
        jnp.zeros((e1,), jnp.int32),                                  # unused
        jax.random.randint(k3, (e1,), 0, n, jnp.int32),               # sub
        jax.random.randint(k4, (e1,), 0, n1, jnp.int32),              # obj
    ], axis=1)
    old_idx1 = jnp.array([0, 4], jnp.int32)

    # layer 2: 16 nodes (unique (batch, ent) pairs), 64 edges; sub < 8, obj < 16
    n2, e2 = 16, 64
    nodes2 = jnp.stack([
        jnp.concatenate([jnp.zeros(8, jnp.int32), jnp.ones(8, jnp.int32)]),
        jnp.concatenate([jnp.arange(8, dtype=jnp.int32),
                         jnp.arange(8, dtype=jnp.int32)])], axis=1)
    edges2 = jnp.stack([
        jax.random.randint(k5, (e2,), 0, n, jnp.int32),
        jnp.zeros((e2,), jnp.int32),
        jax.random.randint(k6, (e2,), 0, 2 * n_rel + 1, jnp.int32),
        jnp.zeros((e2,), jnp.int32),
        jax.random.randint(k7, (e2,), 0, n1, jnp.int32),
        jax.random.randint(k8, (e2,), 0, n2, jnp.int32),
    ], axis=1)
    old_idx2 = jnp.arange(n1, dtype=jnp.int32)

    return [(nodes1, edges1, old_idx1), (nodes2, edges2, old_idx2)]


# ----------------------------------------------------------------------------- #
if __name__ == "__main__":
    n_layer, hidden_dim, attn_dim, n_rel, n_ent = 2, 32, 16, 4, 16

    key = jax.random.PRNGKey(0)
    k_params, k_graph = jax.random.split(key)

    params = make_params(k_params, n_layer, hidden_dim, attn_dim, n_rel)
    prep = prepare_params(params)
    graph_layers = make_synthetic_graph(k_graph, n=2, n_rel=n_rel, n_ent=n_ent)

    subs = jnp.array([0, 1], jnp.int32)   # query head entities
    rels = jnp.array([1, 2], jnp.int32)   # query relations

    fwd = jax.jit(functools.partial(red_gnn_induc_forward, prep=prep,
                                    graph_layers=graph_layers,
                                    n_ent=n_ent, hidden_dim=hidden_dim))
    scores_all = jax.block_until_ready(fwd(subs, rels))

    ref = red_gnn_induc_reference(subs, rels, params, graph_layers, n_ent, hidden_dim)

    assert scores_all.shape == (2, n_ent)
    assert bool(jnp.all(jnp.isfinite(scores_all)))
    # bf16 MXU operands vs pure-f32 reference -> loose eval-grade tolerance
    assert bool(jnp.allclose(scores_all, ref, atol=3e-2, rtol=3e-2)), \
        float(jnp.max(jnp.abs(scores_all - ref)))
    print("KERNEL_OK")
</pallas_src>

<mosaic_0001>
module attributes {stable_mosaic.version = 11 : i64} {
  func.func @fused_layer_kernel(%arg0: i32, %arg1: memref<128x32xbf16, #tpu.memory_space<vmem>>, %arg2: memref<128x32xbf16, #tpu.memory_space<vmem>>, %arg3: memref<128x32xbf16, #tpu.memory_space<vmem>>, %arg4: memref<1x128xi32, #tpu.memory_space<vmem>>, %arg5: memref<16x32xf32, #tpu.memory_space<vmem>>, %arg6: memref<32x16xbf16, #tpu.memory_space<vmem>>, %arg7: memref<32x16xbf16, #tpu.memory_space<vmem>>, %arg8: memref<32x16xbf16, #tpu.memory_space<vmem>>, %arg9: memref<1x16xf32, #tpu.memory_space<vmem>>, %arg10: memref<1x16xf32, #tpu.memory_space<vmem>>, %arg11: memref<1x1xf32, #tpu.memory_space<smem>>, %arg12: memref<32x32xbf16, #tpu.memory_space<vmem>>, %arg13: memref<32x96xbf16, #tpu.memory_space<vmem>>, %arg14: memref<32x96xbf16, #tpu.memory_space<vmem>>, %arg15: memref<1x96xf32, #tpu.memory_space<vmem>>, %arg16: memref<1x96xf32, #tpu.memory_space<vmem>>, %arg17: memref<16x32xf32, #tpu.memory_space<vmem>>, %arg18: memref<16x32xf32, #tpu.memory_space<vmem>>, %arg19: memref<16x1xi32, #tpu.memory_space<vmem>>) attributes {dimension_semantics = [#tpu.dimension_semantics<arbitrary>], iteration_bounds = array<i64: 1>, scalar_prefetch = 0 : i64, scratch_operands = 2 : i64, tpu.core_type = #tpu.core_type<tc>, window_params = [{transform_indices = @transform_0, window_bounds = array<i64: 128, 32>}, {transform_indices = @transform_1, window_bounds = array<i64: 128, 32>}, {transform_indices = @transform_2, window_bounds = array<i64: 128, 32>}, {transform_indices = @transform_3, window_bounds = array<i64: 1, 128>}, {pipeline_mode = #tpu.pipeline_mode<synchronous>, transform_indices = @transform_4, window_bounds = array<i64: 16, 32>}, {pipeline_mode = #tpu.pipeline_mode<synchronous>, transform_indices = @transform_5, window_bounds = array<i64: 32, 16>}, {pipeline_mode = #tpu.pipeline_mode<synchronous>, transform_indices = @transform_6, window_bounds = array<i64: 32, 16>}, {pipeline_mode = #tpu.pipeline_mode<synchronous>, transform_indices = @transform_7, window_bounds = array<i64: 32, 16>}, {pipeline_mode = #tpu.pipeline_mode<synchronous>, transform_indices = @transform_8, window_bounds = array<i64: 1, 16>}, {pipeline_mode = #tpu.pipeline_mode<synchronous>, transform_indices = @transform_9, window_bounds = array<i64: 1, 16>}, {transform_indices = @transform_10, window_bounds = array<i64: 1, 1>}, {pipeline_mode = #tpu.pipeline_mode<synchronous>, transform_indices = @transform_11, window_bounds = array<i64: 32, 32>}, {pipeline_mode = #tpu.pipeline_mode<synchronous>, transform_indices = @transform_12, window_bounds = array<i64: 32, 96>}, {pipeline_mode = #tpu.pipeline_mode<synchronous>, transform_indices = @transform_13, window_bounds = array<i64: 32, 96>}, {pipeline_mode = #tpu.pipeline_mode<synchronous>, transform_indices = @transform_14, window_bounds = array<i64: 1, 96>}, {pipeline_mode = #tpu.pipeline_mode<synchronous>, transform_indices = @transform_15, window_bounds = array<i64: 1, 96>}, {pipeline_mode = #tpu.pipeline_mode<synchronous>, transform_indices = @transform_16, window_bounds = array<i64: 16, 32>}]} {
    %c0_i32 = arith.constant 0 : i32
    %0 = arith.cmpi eq, %arg0, %c0_i32 : i32
    %1 = arith.extui %0 : i1 to i32
    %c0_i32_0 = arith.constant 0 : i32
    %2 = arith.cmpi ne, %1, %c0_i32_0 : i32
    scf.if %2 {
      %cst_34 = arith.constant 0.000000e+00 : f32
      %53 = vector.broadcast %cst_34 : f32 to vector<16x32xf32>
      %c0_35 = arith.constant 0 : index
      %c0_36 = arith.constant 0 : index
      %54 = vector.load %arg18[%c0_35, %c0_36] : memref<16x32xf32, #tpu.memory_space<vmem>>, vector<16x32xf32>
      tpu.vector_store %arg18[%c0_35, %c0_36], %53 {strides = array<i32>} : memref<16x32xf32, #tpu.memory_space<vmem>>, vector<16x32xf32>,
      %55 = tpu.iota {dimensions = array<i32: 0>} : vector<16x1xi32>
      %c0_37 = arith.constant 0 : index
      %c0_38 = arith.constant 0 : index
      %56 = vector.load %arg19[%c0_37, %c0_38] : memref<16x1xi32, #tpu.memory_space<vmem>>, vector<16x1xi32>
      tpu.vector_store %arg19[%c0_37, %c0_38], %55 {strides = array<i32>} : memref<16x1xi32, #tpu.memory_space<vmem>>, vector<16x1xi32>,
    } else {
    }
    %c0 = arith.constant 0 : index
    %c0_1 = arith.constant 0 : index
    %3 = vector.load %arg1[%c0, %c0_1] : memref<128x32xbf16, #tpu.memory_space<vmem>>, vector<128x32xbf16>
    %c0_2 = arith.constant 0 : index
    %c0_3 = arith.constant 0 : index
    %4 = vector.load %arg2[%c0_2, %c0_3] : memref<128x32xbf16, #tpu.memory_space<vmem>>, vector<128x32xbf16>
    %c0_4 = arith.constant 0 : index
    %c0_5 = arith.constant 0 : index
    %5 = vector.load %arg3[%c0_4, %c0_5] : memref<128x32xbf16, #tpu.memory_space<vmem>>, vector<128x32xbf16>
    %c0_6 = arith.constant 0 : index
    %c0_7 = arith.constant 0 : index
    %6 = vector.load %arg6[%c0_6, %c0_7] : memref<32x16xbf16, #tpu.memory_space<vmem>>, vector<32x16xbf16>
    %cst = arith.constant dense<0.000000e+00> : vector<128x16xf32>
    %7 = tpu.matmul %3, %6, %cst {dimension_numbers = #tpu.dot_dimension_numbers<[1], [0], [0], [1], [0, 0, 1, 1], [], []>} : vector<128x32xbf16>, vector<32x16xbf16>, vector<128x16xf32> -> vector<128x16xf32>
    %c0_8 = arith.constant 0 : index
    %c0_9 = arith.constant 0 : index
    %8 = vector.load %arg7[%c0_8, %c0_9] : memref<32x16xbf16, #tpu.memory_space<vmem>>, vector<32x16xbf16>
    %cst_10 = arith.constant dense<0.000000e+00> : vector<128x16xf32>
    %9 = tpu.matmul %4, %8, %cst_10 {dimension_numbers = #tpu.dot_dimension_numbers<[1], [0], [0], [1], [0, 0, 1, 1], [], []>} : vector<128x32xbf16>, vector<32x16xbf16>, vector<128x16xf32> -> vector<128x16xf32>
    %10 = arith.addf %7, %9 : vector<128x16xf32>
    %c0_11 = arith.constant 0 : index
    %c0_12 = arith.constant 0 : index
    %11 = vector.load %arg8[%c0_11, %c0_12] : memref<32x16xbf16, #tpu.memory_space<vmem>>, vector<32x16xbf16>
    %cst_13 = arith.constant dense<0.000000e+00> : vector<128x16xf32>
    %12 = tpu.matmul %5, %11, %cst_13 {dimension_numbers = #tpu.dot_dimension_numbers<[1], [0], [0], [1], [0, 0, 1, 1], [], []>} : vector<128x32xbf16>, vector<32x16xbf16>, vector<128x16xf32> -> vector<128x16xf32>
    %13 = arith.addf %10, %12 : vector<128x16xf32>
    %c0_14 = arith.constant 0 : index
    %c0_15 = arith.constant 0 : index
    %14 = vector.load %arg9[%c0_14, %c0_15] : memref<1x16xf32, #tpu.memory_space<vmem>>, vector<1x16xf32>
    %15 = vector.broadcast %14 : vector<1x16xf32> to vector<128x16xf32>
    %16 = arith.addf %13, %15 : vector<128x16xf32>
    %cst_16 = arith.constant 0.000000e+00 : f32
    %17 = vector.broadcast %cst_16 : f32 to vector<128x16xf32>
    %18 = arith.maximumf %16, %17 : vector<128x16xf32>
    %c0_17 = arith.constant 0 : index
    %c0_18 = arith.constant 0 : index
    %19 = vector.load %arg10[%c0_17, %c0_18] : memref<1x16xf32, #tpu.memory_space<vmem>>, vector<1x16xf32>
    %20 = vector.broadcast %19 : vector<1x16xf32> to vector<128x16xf32>
    %21 = arith.mulf %18, %20 : vector<128x16xf32>
    %cst_19 = arith.constant dense<0.000000e+00> : vector<128xf32>
    %22 = vector.multi_reduction <add>, %21, %cst_19 [1] : vector<128x16xf32> to vector<128xf32>
    %23 = vector.shape_cast %22 : vector<128xf32> to vector<128x1xf32>
    %c0_20 = arith.constant 0 : index
    %c0_21 = arith.constant 0 : index
    %24 = memref.load %arg11[%c0_20, %c0_21] : memref<1x1xf32, #tpu.memory_space<smem>>
    %25 = vector.broadcast %24 : f32 to vector<128x1xf32>
    %26 = arith.addf %23, %25 : vector<128x1xf32>
    %27 = arith.negf %26 : vector<128x1xf32>
    %28 = math.exp %27 : vector<128x1xf32>
    %cst_22 = arith.constant 1.000000e+00 : f32
    %29 = vector.broadcast %cst_22 : f32 to vector<128x1xf32>
    %30 = arith.addf %29, %28 : vector<128x1xf32>
    %31 = arith.divf %29, %30 : vector<128x1xf32>
    %32 = arith.extf %3 : vector<128x32xbf16> to vector<128x32xf32>
    %33 = arith.extf %4 : vector<128x32xbf16> to vector<128x32xf32>
    %34 = arith.addf %32, %33 : vector<128x32xf32>
    %35 = vector.broadcast %31 : vector<128x1xf32> to vector<128x32xf32>
    %36 = arith.mulf %35, %34 : vector<128x32xf32>
    %37 = arith.truncf %36 : vector<128x32xf32> to vector<128x32xbf16>
    %c0_23 = arith.constant 0 : index
    %c0_24 = arith.constant 0 : index
    %38 = vector.load %arg19[%c0_23, %c0_24] : memref<16x1xi32, #tpu.memory_space<vmem>>, vector<16x1xi32>
    %c0_25 = arith.constant 0 : index
    %c0_26 = arith.constant 0 : index
    %39 = vector.load %arg4[%c0_25, %c0_26] : memref<1x128xi32, #tpu.memory_space<vmem>>, vector<1x128xi32>
    %40 = vector.broadcast %38 : vector<16x1xi32> to vector<16x128xi32>
    %41 = vector.broadcast %39 : vector<1x128xi32> to vector<16x128xi32>
    %42 = arith.cmpi eq, %40, %41 : vector<16x128xi32>
    %43 = arith.extui %42 : vector<16x128xi1> to vector<16x128xi32>
    %44 = arith.sitofp %43 : vector<16x128xi32> to vector<16x128xf32>
    %45 = arith.truncf %44 : vector<16x128xf32> to vector<16x128xbf16>
    %c0_27 = arith.constant 0 : index
    %c0_28 = arith.constant 0 : index
    %46 = vector.load %arg18[%c0_27, %c0_28] : memref<16x32xf32, #tpu.memory_space<vmem>>, vector<16x32xf32>
    %cst_29 = arith.constant dense<0.000000e+00> : vector<16x32xf32>
    %47 = tpu.matmul %45, %37, %cst_29 {dimension_numbers = #tpu.dot_dimension_numbers<[1], [0], [0], [1], [0, 0, 1, 1], [], []>} : vector<16x128xbf16>, vector<128x32xbf16>, vector<16x32xf32> -> vector<16x32xf32>
    %48 = arith.addf %46, %47 : vector<16x32xf32>
    %c0_30 = arith.constant 0 : index
    %c0_31 = arith.constant 0 : index
    %49 = vector.load %arg18[%c0_30, %c0_31] : memref<16x32xf32, #tpu.memory_space<vmem>>, vector<16x32xf32>
    tpu.vector_store %arg18[%c0_30, %c0_31], %48 {strides = array<i32>} : memref<16x32xf32, #tpu.memory_space<vmem>>, vector<16x32xf32>,
    %c0_i32_32 = arith.constant 0 : i32
    %50 = arith.cmpi eq, %arg0, %c0_i32_32 : i32
    %51 = arith.extui %50 : i1 to i32
    %c0_i32_33 = arith.constant 0 : i32
    %52 = arith.cmpi ne, %51, %c0_i32_33 : i32
    scf.if %52 {
      %c0_34 = arith.constant 0 : index
      %c0_35 = arith.constant 0 : index
      %53 = vector.load %arg18[%c0_34, %c0_35] : memref<16x32xf32, #tpu.memory_space<vmem>>, vector<16x32xf32>
      %54 = arith.truncf %53 : vector<16x32xf32> to vector<16x32xbf16>
      %c0_36 = arith.constant 0 : index
      %c0_37 = arith.constant 0 : index
      %55 = vector.load %arg12[%c0_36, %c0_37] : memref<32x32xbf16, #tpu.memory_space<vmem>>, vector<32x32xbf16>
      %cst_38 = arith.constant dense<0.000000e+00> : vector<16x32xf32>
      %56 = tpu.matmul %54, %55, %cst_38 {dimension_numbers = #tpu.dot_dimension_numbers<[1], [0], [0], [1], [0, 0, 1, 1], [], []>} : vector<16x32xbf16>, vector<32x32xbf16>, vector<16x32xf32> -> vector<16x32xf32>
      %cst_39 = arith.constant 0.000000e+00 : f32
      %57 = vector.broadcast %cst_39 : f32 to vector<16x32xf32>
      %58 = arith.maximumf %56, %57 : vector<16x32xf32>
      %c0_40 = arith.constant 0 : index
      %c0_41 = arith.constant 0 : index
      %59 = vector.load %arg5[%c0_40, %c0_41] : memref<16x32xf32, #tpu.memory_space<vmem>>, vector<16x32xf32>
      %60 = arith.truncf %58 : vector<16x32xf32> to vector<16x32xbf16>
      %c0_42 = arith.constant 0 : index
      %c0_43 = arith.constant 0 : index
      %61 = vector.load %arg13[%c0_42, %c0_43] : memref<32x96xbf16, #tpu.memory_space<vmem>>, vector<32x96xbf16>
      %cst_44 = arith.constant dense<0.000000e+00> : vector<16x96xf32>
      %62 = tpu.matmul %60, %61, %cst_44 {dimension_numbers = #tpu.dot_dimension_numbers<[1], [0], [0], [1], [0, 0, 1, 1], [], []>} : vector<16x32xbf16>, vector<32x96xbf16>, vector<16x96xf32> -> vector<16x96xf32>
      %c0_45 = arith.constant 0 : index
      %c0_46 = arith.constant 0 : index
      %63 = vector.load %arg15[%c0_45, %c0_46] : memref<1x96xf32, #tpu.memory_space<vmem>>, vector<1x96xf32>
      %64 = vector.broadcast %63 : vector<1x96xf32> to vector<16x96xf32>
      %65 = arith.addf %62, %64 : vector<16x96xf32>
      %66 = arith.truncf %59 : vector<16x32xf32> to vector<16x32xbf16>
      %c0_47 = arith.constant 0 : index
      %c0_48 = arith.constant 0 : index
      %67 = vector.load %arg14[%c0_47, %c0_48] : memref<32x96xbf16, #tpu.memory_space<vmem>>, vector<32x96xbf16>
      %cst_49 = arith.constant dense<0.000000e+00> : vector<16x96xf32>
      %68 = tpu.matmul %66, %67, %cst_49 {dimension_numbers = #tpu.dot_dimension_numbers<[1], [0], [0], [1], [0, 0, 1, 1], [], []>} : vector<16x32xbf16>, vector<32x96xbf16>, vector<16x96xf32> -> vector<16x96xf32>
      %c0_50 = arith.constant 0 : index
      %c0_51 = arith.constant 0 : index
      %69 = vector.load %arg16[%c0_50, %c0_51] : memref<1x96xf32, #tpu.memory_space<vmem>>, vector<1x96xf32>
      %70 = vector.broadcast %69 : vector<1x96xf32> to vector<16x96xf32>
      %71 = arith.addf %68, %70 : vector<16x96xf32>
      %72 = vector.extract_strided_slice %65 {offsets = [0, 0], sizes = [16, 32], strides = [1, 1]} : vector<16x96xf32> to vector<16x32xf32>
      %73 = vector.extract_strided_slice %71 {offsets = [0, 0], sizes = [16, 32], strides = [1, 1]} : vector<16x96xf32> to vector<16x32xf32>
      %74 = arith.addf %72, %73 : vector<16x32xf32>
      %75 = arith.negf %74 : vector<16x32xf32>
      %76 = math.exp %75 : vector<16x32xf32>
      %cst_52 = arith.constant 1.000000e+00 : f32
      %77 = vector.broadcast %cst_52 : f32 to vector<16x32xf32>
      %78 = arith.addf %77, %76 : vector<16x32xf32>
      %79 = arith.divf %77, %78 : vector<16x32xf32>
      %80 = vector.extract_strided_slice %65 {offsets = [0, 32], sizes = [16, 32], strides = [1, 1]} : vector<16x96xf32> to vector<16x32xf32>
      %81 = vector.extract_strided_slice %71 {offsets = [0, 32], sizes = [16, 32], strides = [1, 1]} : vector<16x96xf32> to vector<16x32xf32>
      %82 = arith.addf %80, %81 : vector<16x32xf32>
      %83 = arith.negf %82 : vector<16x32xf32>
      %84 = math.exp %83 : vector<16x32xf32>
      %cst_53 = arith.constant 1.000000e+00 : f32
      %85 = vector.broadcast %cst_53 : f32 to vector<16x32xf32>
      %86 = arith.addf %85, %84 : vector<16x32xf32>
      %87 = arith.divf %85, %86 : vector<16x32xf32>
      %88 = vector.extract_strided_slice %65 {offsets = [0, 64], sizes = [16, 32], strides = [1, 1]} : vector<16x96xf32> to vector<16x32xf32>
      %89 = vector.extract_strided_slice %71 {offsets = [0, 64], sizes = [16, 32], strides = [1, 1]} : vector<16x96xf32> to vector<16x32xf32>
      %90 = arith.mulf %79, %89 : vector<16x32xf32>
      %91 = arith.addf %88, %90 : vector<16x32xf32>
      %92 = math.tanh %91 : vector<16x32xf32>
      %cst_54 = arith.constant 1.000000e+00 : f32
      %93 = vector.broadcast %cst_54 : f32 to vector<16x32xf32>
      %94 = arith.subf %93, %87 : vector<16x32xf32>
      %95 = arith.mulf %94, %92 : vector<16x32xf32>
      %96 = arith.mulf %87, %59 : vector<16x32xf32>
      %97 = arith.addf %95, %96 : vector<16x32xf32>
      %c0_55 = arith.constant 0 : index
      %c0_56 = arith.constant 0 : index
      %98 = vector.load %arg17[%c0_55, %c0_56] : memref<16x32xf32, #tpu.memory_space<vmem>>, vector<16x32xf32>
      tpu.vector_store %arg17[%c0_55, %c0_56], %97 {strides = array<i32>} : memref<16x32xf32, #tpu.memory_space<vmem>>, vector<16x32xf32>,
    } else {
    }
    return
  }
  func.func @transform_0(%arg0: i32) -> (i32, i32) {
    %c0_i32 = arith.constant 0 : i32
    %c0_i32_0 = arith.constant 0 : i32
    return %arg0, %c0_i32 : i32, i32
  }
  func.func @transform_1(%arg0: i32) -> (i32, i32) {
    %c0_i32 = arith.constant 0 : i32
    %c0_i32_0 = arith.constant 0 : i32
    return %arg0, %c0_i32 : i32, i32
  }
  func.func @transform_2(%arg0: i32) -> (i32, i32) {
    %c0_i32 = arith.constant 0 : i32
    %c0_i32_0 = arith.constant 0 : i32
    return %arg0, %c0_i32 : i32, i32
  }
  func.func @transform_3(%arg0: i32) -> (i32, i32) {
    %c0_i32 = arith.constant 0 : i32
    %c0_i32_0 = arith.constant 0 : i32
    return %c0_i32, %arg0 : i32, i32
  }
  func.func @transform_4(%arg0: i32) -> (i32, i32) {
    %c0_i32 = arith.constant 0 : i32
    %c0_i32_0 = arith.constant 0 : i32
    %c0_i32_1 = arith.constant 0 : i32
    return %c0_i32, %c0_i32_0 : i32, i32
  }
  func.func @transform_5(%arg0: i32) -> (i32, i32) {
    %c0_i32 = arith.constant 0 : i32
    %c0_i32_0 = arith.constant 0 : i32
    %c0_i32_1 = arith.constant 0 : i32
    return %c0_i32, %c0_i32_0 : i32, i32
  }
  func.func @transform_6(%arg0: i32) -> (i32, i32) {
    %c0_i32 = arith.constant 0 : i32
    %c0_i32_0 = arith.constant 0 : i32
    %c0_i32_1 = arith.constant 0 : i32
    return %c0_i32, %c0_i32_0 : i32, i32
  }
  func.func @transform_7(%arg0: i32) -> (i32, i32) {
    %c0_i32 = arith.constant 0 : i32
    %c0_i32_0 = arith.constant 0 : i32
    %c0_i32_1 = arith.constant 0 : i32
    return %c0_i32, %c0_i32_0 : i32, i32
  }
  func.func @transform_8(%arg0: i32) -> (i32, i32) {
    %c0_i32 = arith.constant 0 : i32
    %c0_i32_0 = arith.constant 0 : i32
    %c0_i32_1 = arith.constant 0 : i32
    return %c0_i32, %c0_i32_0 : i32, i32
  }
  func.func @transform_9(%arg0: i32) -> (i32, i32) {
    %c0_i32 = arith.constant 0 : i32
    %c0_i32_0 = arith.constant 0 : i32
    %c0_i32_1 = arith.constant 0 : i32
    return %c0_i32, %c0_i32_0 : i32, i32
  }
  func.func @transform_10(%arg0: i32) -> (i32, i32) {
    %c0_i32 = arith.constant 0 : i32
    %c0_i32_0 = arith.constant 0 : i32
    %c0_i32_1 = arith.constant 0 : i32
    return %c0_i32, %c0_i32_0 : i32, i32
  }
  func.func @transform_11(%arg0: i32) -> (i32, i32) {
    %c0_i32 = arith.constant 0 : i32
    %c0_i32_0 = arith.constant 0 : i32
    %c0_i32_1 = arith.constant 0 : i32
    return %c0_i32, %c0_i32_0 : i32, i32
  }
  func.func @transform_12(%arg0: i32) -> (i32, i32) {
    %c0_i32 = arith.constant 0 : i32
    %c0_i32_0 = arith.constant 0 : i32
    %c0_i32_1 = arith.constant 0 : i32
    return %c0_i32, %c0_i32_0 : i32, i32
  }
  func.func @transform_13(%arg0: i32) -> (i32, i32) {
    %c0_i32 = arith.constant 0 : i32
    %c0_i32_0 = arith.constant 0 : i32
    %c0_i32_1 = arith.constant 0 : i32
    return %c0_i32, %c0_i32_0 : i32, i32
  }
  func.func @transform_14(%arg0: i32) -> (i32, i32) {
    %c0_i32 = arith.constant 0 : i32
    %c0_i32_0 = arith.constant 0 : i32
    %c0_i32_1 = arith.constant 0 : i32
    return %c0_i32, %c0_i32_0 : i32, i32
  }
  func.func @transform_15(%arg0: i32) -> (i32, i32) {
    %c0_i32 = arith.constant 0 : i32
    %c0_i32_0 = arith.constant 0 : i32
    %c0_i32_1 = arith.constant 0 : i32
    return %c0_i32, %c0_i32_0 : i32, i32
  }
  func.func @transform_16(%arg0: i32) -> (i32, i32) {
    %c0_i32 = arith.constant 0 : i32
    %c0_i32_0 = arith.constant 0 : i32
    %c0_i32_1 = arith.constant 0 : i32
    return %c0_i32, %c0_i32_0 : i32, i32
  }
}

</mosaic_0001>

<bundles_post_ra>
// kernel: red_gnn_induc_forward.2
= control target key start
LH: loop header
LB: loop body
LE: loop exit
PB: predicated region body
PF: predicated region fallthrough
CT: control target
= control target key end

     0   :  { %vm59_vm0 = vcmask 261120   ;;  %vm576_vm1 = vcmask 130048   ;;  %vm65_vm2 = vcmask 7168   ;;  %s1597_s22 = smov 64   ;;  %s2398_s6 = inlined_call_operand.vmem [shape: bf16[32,16], index: 6, kind: input, shape index: {}]   ;;  %s2399_s5 = inlined_call_operand.vmem [shape: bf16[32,16], index: 5, kind: input, shape index: {}]   ;;  %s2400_s7 = inlined_call_operand.vmem [shape: bf16[32,16], index: 7, kind: input, shape index: {}]   ;;  %s2401_s1 = inlined_call_operand.vmem [shape: bf16[128,32], index: 1, kind: input, shape index: {}]   ;;  %s2402_s0 = inlined_call_operand.vmem [shape: bf16[128,32], index: 0, kind: input, shape index: {}]   ;;  %s2403_s2 = inlined_call_operand.vmem [shape: bf16[128,32], index: 2, kind: input, shape index: {}]   ;;  %s2404_s8 = inlined_call_operand.vmem [shape: f32[1,16], index: 8, kind: input, shape index: {}]   ;;  %s2405_s9 = inlined_call_operand.vmem [shape: f32[1,16], index: 9, kind: input, shape index: {}]   ;;  %s2406_s3 = inlined_call_operand.vmem [shape: s32[1,128], index: 3, kind: input, shape index: {}]   ;;  %s2407_s10 = inlined_call_operand.<no memory space> [shape: f32[1,1], index: 10, kind: input, shape index: {}]   ;;  %s2408_s11 = inlined_call_operand.vmem [shape: bf16[32,32], index: 11, kind: input, shape index: {}]   ;;  %s2409_s12 = inlined_call_operand.vmem [shape: bf16[32,96], index: 12, kind: input, shape index: {}]   ;;  %s2410_s14 = inlined_call_operand.vmem [shape: f32[1,96], index: 14, kind: input, shape index: {}]   ;;  %s2411_s13 = inlined_call_operand.vmem [shape: bf16[32,96], index: 13, kind: input, shape index: {}]   ;;  %s2412_s4 = inlined_call_operand.vmem [shape: f32[16,32], index: 4, kind: input, shape index: {}, may-alias: {4,16}]   ;;  %s2413_s15 = inlined_call_operand.vmem [shape: f32[1,96], index: 15, kind: input, shape index: {}]   ;;  %s2414_s16 = inlined_call_operand.vmem [shape: f32[16,32], index: 16, kind: output, shape index: {}, may-alias: {4,16}]  }
   0x1   :  { %2416 = sst [smem:[#allocation5_spill]] %s2398_s6  ;;  %v1493_v1 = vld [vmem:[%s2399_s5 + $0x8] sm:$0xff]  ;;  %v1492_v4 = vld [vmem:[%s2399_s5] sm:$0xff]  ;;  %v1478_v12 = vld [vmem:[%s2401_s1 + $0x10] sm:$0xff] }
   0x2   :  { %s2417_s23 = sld [smem:[#allocation5_spill]]  ;;  %v1497_v2 = vld [vmem:[%s2400_s7 + $0x8] sm:$0xff]  ;;  %332 = vmatpush.bf16.msra.mxu1 %v1493_v1  ;;  %v1496_v5 = vld [vmem:[%s2400_s7] sm:$0xff]  ;;  %v1470_v13 = vld [vmem:[%s2402_s0 + $0x10] sm:$0xff] }
   0x3   :  { %461 = vmatpush.bf16.msra.mxu2 %v1497_v2  ;;  %v1476_v6 = vld [vmem:[%s2401_s1] sm:$0xff]  ;;  %v1477_v9 = vld [vmem:[%s2401_s1 + $0x8] sm:$0xff]  ;;  %v1486_v14 = vld [vmem:[%s2403_s2 + $0x10] sm:$0xff] }
   0x4   :  { %v1468_v7 = vld [vmem:[%s2402_s0] sm:$0xff]  ;;  %v1469_v10 = vld [vmem:[%s2402_s0 + $0x8] sm:$0xff]  ;;  %v1479_v15 = vld [vmem:[%s2401_s1 + $0x18] sm:$0xff] }
   0x5   :  { %v1484_v8 = vld [vmem:[%s2403_s2] sm:$0xff]  ;;  %v1485_v11 = vld [vmem:[%s2403_s2 + $0x8] sm:$0xff]  ;;  %v1471_v16 = vld [vmem:[%s2402_s0 + $0x18] sm:$0xff] }
   0x6   :  { %333 = vmatpush.bf16.msra.mxu1 %v1492_v4  ;;  %v1487_v17 = vld [vmem:[%s2403_s2 + $0x18] sm:$0xff]  ;;  %v1480_v18 = vld [vmem:[%s2401_s1 + $0x20] sm:$0xff]  ;;  %v1481_v21 = vld [vmem:[%s2401_s1 + $0x28] sm:$0xff] }
   0x7   :  { %462 = vmatpush.bf16.msra.mxu2 %v1496_v5  ;;  %v1472_v19 = vld [vmem:[%s2402_s0 + $0x20] sm:$0xff]  ;;  %v1473_v22 = vld [vmem:[%s2402_s0 + $0x28] sm:$0xff]  ;;  %v1482_v24 = vld [vmem:[%s2401_s1 + $0x30] sm:$0xff] }
   0x8   :  { %v1495_v0 = vld [vmem:[%s2417_s23 + $0x8] sm:$0xff]  ;;  %v1494_v3 = vld [vmem:[%s2417_s23] sm:$0xff]  ;;  %v1474_v25 = vld [vmem:[%s2402_s0 + $0x30] sm:$0xff] }
   0x9   :  { %207 = vmatpush.bf16.msra.mxu0 %v1495_v0  ;;  %1363 = vmatmul.msk.bf16.vlgmr.msra.gmra.mxu1 %vm59_vm0, %v1468_v7  ;;  %v1488_v20 = vld [vmem:[%s2403_s2 + $0x20] sm:$0xff]  ;;  %v1489_v23 = vld [vmem:[%s2403_s2 + $0x28] sm:$0xff]  ;;  %v1490_v26 = vld [vmem:[%s2403_s2 + $0x30] sm:$0xff] }
   0xa   :  { %1411 = vmatmul.msk.bf16.vlgmr.msra.gmra.mxu2 %vm59_vm0, %v1484_v8  ;;  %v1483_v27 = vld [vmem:[%s2401_s1 + $0x38] sm:$0xff] }
   0xb   :  { %v1475_v28 = vld [vmem:[%s2402_s0 + $0x38] sm:$0xff] }
   0xc   :  { %v1491_v29 = vld [vmem:[%s2403_s2 + $0x38] sm:$0xff] }
   0xd   :  { %208 = vmatpush.bf16.msra.mxu0 %v1494_v3 }
  0x10   :  { %1315 = vmatmul.msk.bf16.vlgmr.msra.gmra.mxu0 %vm59_vm0, %v1476_v6 }
  0x19   :  { %1364 = vmatmul.msk.bf16.gmra.mxu1 %vm59_vm0, %v1469_v10 }
  0x1a   :  { %1412 = vmatmul.msk.bf16.gmra.mxu2 %vm59_vm0, %v1485_v11 }
  0x20   :  { %1316 = vmatmul.msk.bf16.gmra.mxu0 %vm59_vm0, %v1477_v9 }
  0x29   :  { %1365 = vmatmul.msk.bf16.gmra.mxu1 %vm59_vm0, %v1470_v13 }
  0x2a   :  { %1413 = vmatmul.msk.bf16.gmra.mxu2 %vm59_vm0, %v1486_v14 }
  0x30   :  { %1317 = vmatmul.msk.bf16.gmra.mxu0 %vm59_vm0, %v1478_v12 }
  0x39   :  { %1366 = vmatmul.msk.bf16.gmra.mxu1 %vm59_vm0, %v1471_v16  ;;  %v1816_v16 = vld [vmem:[%s2404_s8] ss:$0 sm:$0xff] }
  0x3a   :  { %1414 = vmatmul.msk.bf16.gmra.mxu2 %vm59_vm0, %v1487_v17 }
  0x40   :  { %1318 = vmatmul.msk.bf16.gmra.mxu0 %vm59_vm0, %v1479_v15 }
  0x49   :  { %1367 = vmatmul.msk.bf16.gmra.mxu1 %vm59_vm0, %v1472_v19 }
  0x4a   :  { %1415 = vmatmul.msk.bf16.gmra.mxu2 %vm59_vm0, %v1488_v20 }
  0x50   :  { %1319 = vmatmul.msk.bf16.gmra.mxu0 %vm59_vm0, %v1480_v18 }
  0x59   :  { %1368 = vmatmul.msk.bf16.gmra.mxu1 %vm59_vm0, %v1473_v22 }
  0x5a   :  { %1416 = vmatmul.msk.bf16.gmra.mxu2 %vm59_vm0, %v1489_v23  ;;  %v1822_v23 = vld [vmem:[%s2405_s9] ss:$0 sm:$0xff] }
  0x60   :  { %1320 = vmatmul.msk.bf16.gmra.mxu0 %vm59_vm0, %v1481_v21 }
  0x69   :  { %1369 = vmatmul.msk.bf16.gmra.mxu1 %vm59_vm0, %v1474_v25 }
  0x6a   :  { %1417 = vmatmul.msk.bf16.gmra.mxu2 %vm59_vm0, %v1490_v26 }
  0x70   :  { %1321 = vmatmul.msk.bf16.gmra.mxu0 %vm59_vm0, %v1482_v24 }
  0x79   :  { %1370 = vmatmul.msk.bf16.gmra.mxu1 %vm59_vm0, %v1475_v28 }
  0x7a   :  { %1418 = vmatmul.msk.bf16.gmra.mxu2 %vm59_vm0, %v1491_v29 }
  0x80   :  { %1322 = vmatmul.msk.bf16.gmra.mxu0 %vm59_vm0, %v1483_v27 }
  0x86   :  { %v335_v31 = vpop.f32.mrf.mxu1 }
  0x8d   :  { %v210_v30 = vpop.f32.mrf.mxu0  ;;  %v464_v33 = vpop.f32.mrf.mxu2 }
  0x8e   :  { %v336_v32 = vadd.f32 %v335_v31, %v210_v30  ;;  %v337_v36 = vpop.f32.mrf.mxu1 }
  0x90   :  { %v1799_v34 = vadd.f32 %v464_v33, %v336_v32 }
  0x95   :  { %v212_v35 = vpop.f32.mrf.mxu0  ;;  %v466_v38 = vpop.f32.mrf.mxu2 }
  0x96   :  { %v338_v37 = vadd.f32 %v337_v36, %v212_v35  ;;  %v340_v41 = vpop.f32.mrf.mxu1 }
  0x98   :  { %v1801_v39 = vadd.f32 %v466_v38, %v338_v37 }
  0x9d   :  { %v215_v40 = vpop.f32.mrf.mxu0  ;;  %v469_v43 = vpop.f32.mrf.mxu2 }
  0x9e   :  { %v341_v42 = vadd.f32 %v340_v41, %v215_v40  ;;  %v342_v46 = vpop.f32.mrf.mxu1 }
  0xa0   :  { %v1803_v44 = vadd.f32 %v469_v43, %v341_v42 }
  0xa5   :  { %v217_v45 = vpop.f32.mrf.mxu0  ;;  %v471_v48 = vpop.f32.mrf.mxu2 }
  0xa6   :  { %v343_v47 = vadd.f32 %v342_v46, %v217_v45  ;;  %v345_v51 = vpop.f32.mrf.mxu1 }
  0xa8   :  { %v1805_v49 = vadd.f32 %v471_v48, %v343_v47 }
  0xad   :  { %v220_v50 = vpop.f32.mrf.mxu0  ;;  %v474_v53 = vpop.f32.mrf.mxu2 }
  0xae   :  { %v346_v52 = vadd.f32 %v345_v51, %v220_v50  ;;  %v347_v56 = vpop.f32.mrf.mxu1 }
  0xb0   :  { %v1807_v54 = vadd.f32 %v474_v53, %v346_v52 }
  0xb5   :  { %v222_v55 = vpop.f32.mrf.mxu0  ;;  %v476_v58 = vpop.f32.mrf.mxu2 }
  0xb6   :  { %v348_v57 = vadd.f32 %v347_v56, %v222_v55  ;;  %v350_v61 = vpop.f32.mrf.mxu1 }
  0xb8   :  { %v509_v59 = vadd.f32 %v476_v58, %v348_v57 }
  0xba   :  { %v529_v47 = vadd.f32 %v1816_v16, %v509_v59 }
  0xbc   :  { %v545_v55 = vmax.f32 %v529_v47, 0.0 }
  0xbd   :  { %v225_v60 = vpop.f32.mrf.mxu0  ;;  %v479_v62 = vpop.f32.mrf.mxu2 }
  0xbe   :  { %v352_v0 = vpop.f32.mrf.mxu1  ;;  %v351_v21 = vadd.f32 %v350_v61, %v225_v60 }
  0xc0   :  { %v510_v27 = vadd.f32 %v479_v62, %v351_v21 }
  0xc2   :  { %v530_v33 = vadd.f32 %v1816_v16, %v510_v27 }
  0xc4   :  { %v546_v40 = vmax.f32 %v530_v33, 0.0 }
  0xc5   :  { %v227_v63 = vpop.f32.mrf.mxu0  ;;  %v481_v2 = vpop.f32.mrf.mxu2 }
  0xc6   :  { %v353_v1 = vadd.f32 %v352_v0, %v227_v63  ;;  %v355_v5 = vpop.f32.mrf.mxu1  ;;  %v566_v50 = vmul.f32 %v1822_v23, %v546_v40 }
  0xc8   :  { %v1809_v3 = vadd.f32 %v481_v2, %v353_v1  ;;  %v595_v61 = vsel %vm576_vm1, %v566_v50, 0.0  ;;  %v526_v50 = vadd.f32 %v1816_v16, %v1803_v44 }
  0xcd   :  { %v230_v4 = vpop.f32.mrf.mxu0  ;;  %v484_v7 = vpop.f32.mrf.mxu2 }
  0xce   :  { %v356_v6 = vadd.f32 %v355_v5, %v230_v4  ;;  %v357_v10 = vpop.f32.mrf.mxu1  ;;  %v565_v4 = vmul.f32 %v1822_v23, %v545_v55  ;;  %v524_v5 = vadd.f32 %v1816_v16, %v1799_v34 }
  0xd0   :  { %v1811_v8 = vadd.f32 %v484_v7, %v356_v6 }
  0xd5   :  { %v232_v9 = vpop.f32.mrf.mxu0  ;;  %v486_v11 = vpop.f32.mrf.mxu2 }
  0xd6   :  { %v360_v13 = vpop.f32.mrf.mxu1  ;;  %v358_v51 = vadd.f32 %v357_v10, %v232_v9 }
  0xd8   :  { %v513_v57 = vadd.f32 %v486_v11, %v358_v51 }
  0xda   :  { %v533_v0 = vadd.f32 %v1816_v16, %v513_v57 }
  0xdc   :  { %v549_v9 = vmax.f32 %v533_v0, 0.0 }
  0xdd   :  { %v235_v12 = vpop.f32.mrf.mxu0  ;;  %v489_v15 = vpop.f32.mrf.mxu2 }
  0xde   :  { %v361_v14 = vadd.f32 %v360_v13, %v235_v12  ;;  %v362_v19 = vpop.f32.mrf.mxu1  ;;  %v592_v12 = vsel %vm576_vm1, %v565_v4, 0.0  ;;  %v540_v13 = vmax.f32 %v524_v5, 0.0 }
  0xe0   :  { %v514_v17 = vadd.f32 %v489_v15, %v361_v14 }
  0xe2   :  { %v534_v20 = vadd.f32 %v1816_v16, %v514_v17 }
  0xe4   :  { %v550_v22 = vmax.f32 %v534_v20, 0.0  ;;  %v560_v20 = vmul.f32 %v1822_v23, %v540_v13 }
  0xe5   :  { %v237_v18 = vpop.f32.mrf.mxu0  ;;  %v491_v26 = vpop.f32.mrf.mxu2 }
  0xe6   :  { %v363_v24 = vadd.f32 %v362_v19, %v237_v18  ;;  %v570_v25 = vmul.f32 %v1822_v23, %v550_v22  ;;  %v365_v30 = vpop.f32.mrf.mxu1  ;;  %v528_v18 = vadd.f32 %v1816_v16, %v1807_v54  ;;  %v569_v19 = vmul.f32 %v1822_v23, %v549_v9 }
  0xe8   :  { %v515_v28 = vadd.f32 %v491_v26, %v363_v24  ;;  %v607_v31 = vsel %vm576_vm1, %v570_v25, 0.0  ;;  %v544_v25 = vmax.f32 %v528_v18, 0.0 }
  0xe9   :  { %608 = vadd.xlane.f32.xlu2 %v607_v31  ;;  %v532_v31 = vadd.f32 %v1816_v16, %v1811_v8  ;;  %v531_v8 = vadd.f32 %v1816_v16, %v1809_v3 }
  0xea   :  { %v535_v32 = vadd.f32 %v1816_v16, %v515_v28  ;;  %v604_v28 = vsel %vm576_vm1, %v569_v19, 0.0  ;;  %v564_v33 = vmul.f32 %v1822_v23, %v544_v25 }
  0xec   :  { %v551_v35 = vmax.f32 %v535_v32, 0.0  ;;  %v589_v40 = vsel %vm576_vm1, %v564_v33, 0.0 }
  0xed   :  { %v240_v29 = vpop.f32.mrf.mxu0  ;;  %v494_v38 = vpop.f32.mrf.mxu2 }
  0xee   :  { %v366_v36 = vadd.f32 %v365_v30, %v240_v29  ;;  %v571_v37 = vmul.f32 %v1822_v23, %v551_v35  ;;  %v367_v43 = vpop.f32.mrf.mxu1  ;;  %v577_v29 = vsel %vm576_vm1, %v560_v20, 0.0  ;;  %v527_v30 = vadd.f32 %v1816_v16, %v1805_v49 }
  0xf0   :  { %v516_v41 = vadd.f32 %v494_v38, %v366_v36  ;;  %v610_v45 = vsel %vm576_vm1, %v571_v37, 0.0  ;;  %v543_v36 = vmax.f32 %v527_v30, 0.0  ;;  %v548_v37 = vmax.f32 %v532_v31, 0.0 }
  0xf1   :  { %611 = vadd.xlane.f32.xlu2 %v610_v45 }
  0xf2   :  { %v536_v46 = vadd.f32 %v1816_v16, %v516_v41  ;;  %v62_v41 = vlaneseq  ;;  %v563_v45 = vmul.f32 %v1822_v23, %v543_v36 }
  0xf4   :  { %v552_v48 = vmax.f32 %v536_v46, 0.0  ;;  %v63_v49 = vshrl.u32 %v62_v41, 7  ;;  %v547_v46 = vmax.f32 %v531_v8, 0.0 }
  0xf5   :  { %v242_v42 = vpop.f32.mrf.mxu0  ;;  %v496_v56 = vpop.f32.mrf.mxu2 }
  0xf6   :  { %v368_v52 = vadd.f32 %v367_v43, %v242_v42  ;;  %v572_v53 = vmul.f32 %v1822_v23, %v552_v48  ;;  %v370_v63 = vpop.f32.mrf.mxu1  ;;  %v1594_v42 = vmov 0   ;;  %v568_v43 = vmul.f32 %v1822_v23, %v548_v37  ;;  %66 = vst.msk [vmem:[#allocation3] sm:$0xff] %vm65_vm2, %v63_v49 }
  0xf7   :  { %1510 = vset.pattern.permute.xlu1 %v1594_v42  ;;  %1511 = vset.pattern.permute.xlu2 %v1594_v42  ;;  %v586_v48 = vsel %vm576_vm1, %v563_v45, 0.0  ;;  %v567_v51 = vmul.f32 %v1822_v23, %v547_v46 }
  0xf8   :  { %v517_v58 = vadd.f32 %v496_v56, %v368_v52  ;;  %v613_v60 = vsel %vm576_vm1, %v572_v53, 0.0  ;;  %1512 = vset.pattern.permute.xlu0 %v1594_v42  ;;  %v601_v47 = vsel %vm576_vm1, %v568_v43, 0.0  ;;  %v542_v52 = vmax.f32 %v526_v50, 0.0 }
  0xf9   :  { %614 = vadd.xlane.f32.xlu1 %v613_v60  ;;  %596 = vadd.xlane.f32.xlu2 %v595_v61  ;;  %v598_v3 = vsel %vm576_vm1, %v567_v51, 0.0  ;;  %v525_v53 = vadd.f32 %v1816_v16, %v1801_v39  ;;  %v64_v61 = vadd.s32 8, %v63_v49  ;;  %v1883_v39 = vstv %s2407_s10 }
  0xfa   :  { %v537_v59 = vadd.f32 %v1816_v16, %v517_v58  ;;  %v562_v55 = vmul.f32 %v1822_v23, %v542_v52  ;;  %v1941_v52 = vld [vmem:[%s2402_s0 + $0x38] sm:$0xff]  }
  0xfb   :  { %v541_v56 = vmax.f32 %v525_v53, 0.0  ;;  %67 = vst.msk [vmem:[#allocation3 + $0x8] sm:$0xff] %vm65_vm2, %v64_v61 }
  0xfc   :  { %v553_v1 = vmax.f32 %v537_v59, 0.0  ;;  %v583_v57 = vsel %vm576_vm1, %v562_v55, 0.0 }
  0xfd   :  { %v245_v62 = vpop.f32.mrf.mxu0  ;;  %v499_v7 = vpop.f32.mrf.mxu2  ;;  %v561_v58 = vmul.f32 %v1822_v23, %v541_v56  ;;  %v1019_v60 = vld [vmem:[#allocation3] sm:$0xff] }
  0xfe   :  { %v371_v2 = vadd.f32 %v370_v63, %v245_v62  ;;  %v573_v6 = vmul.f32 %v1822_v23, %v553_v1  ;;  %v372_v17 = vpop.f32.mrf.mxu1 }
  0xff   :  { %v580_v44 = vsel %vm576_vm1, %v561_v58, 0.0 }
 0x100   :  { %v518_v10 = vadd.f32 %v499_v7, %v371_v2  ;;  %v616_v11 = vsel %vm576_vm1, %v573_v6, 0.0 }
 0x101   :  { %617 = vadd.xlane.f32.xlu1 %v616_v11  ;;  %593 = vadd.xlane.f32.xlu2 %v592_v12 }
 0x102   :  { %v538_v14 = vadd.f32 %v1816_v16, %v518_v10  ;;  %v1020_v62 = vld [vmem:[#allocation3 + $0x8] sm:$0xff] }
 0x104   :  { %v554_v34 = vmax.f32 %v538_v14, 0.0 }
 0x105   :  { %v247_v15 = vpop.f32.mrf.mxu0  ;;  %v501_v24 = vpop.f32.mrf.mxu2 }
 0x106   :  { %v373_v21 = vadd.f32 %v372_v17, %v247_v15  ;;  %v574_v22 = vmul.f32 %v1822_v23, %v554_v34  ;;  %v78_v15 = vld [vmem:[%s2402_s0 + $0x28] sm:$0xff]  }
 0x107   :  { %v94_v17 = vld [vmem:[%s2401_s1 + $0x28] sm:$0xff]  }
 0x108   :  { %v519_v26 = vadd.f32 %v501_v24, %v373_v21  ;;  %v619_v27 = vsel %vm576_vm1, %v574_v22, 0.0  ;;  %v957_v21 = vunpack.c.l.bf16 %v78_v15  ;;  %v973_v22 = vunpack.c.l.bf16 %v94_v17 }
 0x109   :  { %620 = vadd.xlane.f32.xlu0 %v619_v27  ;;  %605 = vadd.xlane.f32.xlu1 %v604_v28  ;;  %v96_v27 = vld [vmem:[%s2401_s1 + $0x30] sm:$0xff]   ;;  %v958_v28 = vunpack.c.h.bf16 %v78_v15 }
 0x10a   :  { %v539_v54 = vadd.f32 %v1816_v16, %v519_v26  ;;  %578 = vadd.xlane.f32.xlu2 %v577_v29  ;;  %v1910_v26 = vld [vmem:[%s2402_s0 + $0x30] sm:$0xff]   ;;  %v974_v29 = vunpack.c.h.bf16 %v94_v17  ;;  %v989_v49 = vadd.f32 %v973_v22, %v957_v21 }
 0x10c   :  { %v555_v32 = vmax.f32 %v539_v54, 0.0  ;;  %v1925_v8 = vadd.f32 %v974_v29, %v958_v28 }
 0x10e   :  { %v575_v35 = vmul.f32 %v1822_v23, %v555_v32 }
 0x110   :  { %v622_v38 = vsel %vm576_vm1, %v575_v35, 0.0 }
 0x111   :  { %623 = vadd.xlane.f32.xlu0 %v622_v38  ;;  %590 = vadd.xlane.f32.xlu1 %v589_v40  ;;  %v959_v38 = vunpack.c.l.bf16 %v1910_v26  ;;  %v975_v40 = vunpack.c.l.bf16 %v96_v27 }
 0x119   :  { %602 = vadd.xlane.f32.xlu0 %v601_v47  ;;  %587 = vadd.xlane.f32.xlu1 %v586_v48 }
 0x121   :  { %599 = vadd.xlane.f32.xlu0 %v598_v3  ;;  %v1943_v3 = vadd.f32 %v975_v40, %v959_v38 }
 0x122   :  { %1026 = vperm.xlu2 %1511, %v1020_v62  }
 0x129   :  { %584 = vadd.xlane.f32.xlu0 %v583_v57 }
 0x131   :  { %581 = vadd.xlane.f32.xlu0 %v580_v44  ;;  %v960_v44 = vunpack.c.h.bf16 %v1910_v26 }
 0x132   :  { %1023 = vperm.xlu1 %1510, %v1019_v60   ;;  %v1951_v60 = vld [vmem:[%s2401_s1 + $0x38] sm:$0xff]  }
 0x15c   :  { %v609_v16 = vpop.xlane.xlu2 %608 }
 0x15d   :  { %v637_v63 = vadd.f32 %v1883_v39, %v609_v16  ;;  %v976_v16 = vunpack.c.h.bf16 %v96_v27  ;;  %v2002_v27 = vld [vmem:[%s2402_s0 + $0x20] sm:$0xff]  }
 0x15f   :  { %v1429_v59 = vmul.f32 -1.442695, %v637_v63  ;;  %v1985_v17 = vadd.f32 %v976_v16, %v960_v44 }
 0x161   :  { %1518 = vpow2.f32 %v1429_v59 }
 0x164   :  { %v612_v23 = vpop.xlane.xlu2 %611 }
 0x165   :  { %v638_v0 = vadd.f32 %v1883_v39, %v612_v23 }
 0x167   :  { %v1519_v1 = vpop.eup %1518  ;;  %v1430_v2 = vmul.f32 -1.442695, %v638_v0 }
 0x168   :  { %v1887_v4 = vadd.f32 1.0, %v1519_v1 }
 0x169   :  { %1520 = vpow2.f32 %v1430_v2  ;;  %v961_v2 = vunpack.c.l.bf16 %v1941_v52 }
 0x16a   :  { %1522 = vrcp.f32 %v1887_v4  ;;  %v866_v30 = vand.u32 2147483647, %v1887_v4  ;;  %v868_v35 = vand.u32 2147483648, %v1887_v4  ;;  %vm862_vm3 = vweird.f32 %v1887_v4 }
 0x16c   :  { %v615_v5 = vpop.xlane.xlu1 %614  ;;  %v597_v6 = vpop.xlane.xlu2 %596  ;;  %vm1931_vm5 = vcmp.eq.f32.partialorder %v866_v30, 8.507059e+37  ;;  %v869_v46 = vor.u32 1.1754944e-38, %v868_v35 }
 0x16d   :  { %v639_v7 = vadd.f32 %v1883_v39, %v615_v5  ;;  %v633_v9 = vadd.f32 %v1883_v39, %v597_v6 }
 0x16f   :  { %v1521_v10 = vpop.eup %1520  ;;  %v1431_v11 = vmul.f32 -1.442695, %v639_v7  ;;  %v1425_v12 = vmul.f32 -1.442695, %v633_v9  ;;  %v977_v7 = vunpack.c.l.bf16 %v1951_v60 }
 0x170   :  { %v1892_v13 = vpop.eup %1522  ;;  %v1894_v14 = vadd.f32 1.0, %v1521_v10 }
 0x171   :  { %1524 = vpow2.f32 %v1431_v11  ;;  %v858_v18 = vmul.f32 %v1892_v13, %v1887_v4  ;;  %vm863_vm4 = vweird.f32 %v1892_v13 }
 0x172   :  { %1526 = vrcp.f32 %v1894_v14  ;;  %v883_v47 = vand.u32 2147483648, %v1894_v14  ;;  %v881_v55 = vand.u32 2147483647, %v1894_v14  ;;  %vm1958_vm6 = vmor %vm862_vm3, %vm863_vm4  ;;  %vm877_vm7 = vweird.f32 %v1894_v14 }
 0x173   :  { %1528 = vpow2.f32 %v1425_v12  ;;  %v859_v34 = vsub.f32 1.0, %v858_v18 }
 0x174   :  { %v618_v19 = vpop.xlane.xlu1 %617  ;;  %v594_v20 = vpop.xlane.xlu2 %593  ;;  %v884_v4 = vor.u32 1.1754944e-38, %v883_v47  ;;  %vm1976_vm8 = vcmp.eq.f32.partialorder %v881_v55, 8.507059e+37 }
 0x175   :  { %v640_v24 = vadd.f32 %v1883_v39, %v618_v19  ;;  %v632_v25 = vadd.f32 %v1883_v39, %v594_v20  ;;  %v860_v54 = vmul.f32 %v1892_v13, %v859_v34 }
 0x177   :  { %v1525_v31 = vpop.eup %1524  ;;  %v1432_v32 = vmul.f32 -1.442695, %v640_v24  ;;  %v1424_v33 = vmul.f32 -1.442695, %v632_v25  ;;  %v861_v43 = vadd.f32 %v1892_v13, %v860_v54  ;;  %v1993_v24 = vadd.f32 %v977_v7, %v961_v2 }
 0x178   :  { %v1918_v36 = vpop.eup %1526  ;;  %v1920_v37 = vadd.f32 1.0, %v1525_v31 }
 0x179   :  { %v1529_v41 = vpop.eup %1528  ;;  %1530 = vpow2.f32 %v1432_v32  ;;  %v873_v42 = vmul.f32 %v1918_v36, %v1894_v14  ;;  %v865_v63 = vsel %vm1958_vm6, %v1892_v13, %v861_v43  ;;  %vm878_vm9 = vweird.f32 %v1918_v36 }
 0x17a   :  { %1532 = vrcp.f32 %v1920_v37  ;;  %v1936_v48 = vadd.f32 1.0, %v1529_v41  ;;  %v898_v9 = vand.u32 2147483648, %v1920_v37  ;;  %v870_v15 = vsel %vm1931_vm5, %v869_v46, %v865_v63  ;;  %vm2010_vm11 = vmor %vm877_vm7, %vm878_vm9  ;;  %v2037_v46 = vld [vmem:[%s2401_s1 + $0x20] sm:$0xff]  }
 0x17b   :  { %1534 = vpow2.f32 %v1424_v33  ;;  %v874_v53 = vsub.f32 1.0, %v873_v42  ;;  %vm892_vm10 = vweird.f32 %v1920_v37  ;;  %v896_v19 = vand.u32 2147483647, %v1920_v37 }
 0x17c   :  { %v621_v50 = vpop.xlane.xlu0 %620  ;;  %v606_v51 = vpop.xlane.xlu1 %605  ;;  %1536 = vrcp.f32 %v1936_v48  ;;  %v1995_v25 = vor.u32 1.1754944e-38, %v898_v9  ;;  %v1997_v26 = vmul.f32 %v989_v49, %v870_v15  ;;  %v806_v30 = vand.u32 2147483647, %v1936_v48 }
 0x17d   :  { %v641_v56 = vadd.f32 %v1883_v39, %v621_v50  ;;  %v636_v57 = vadd.f32 %v1883_v39, %v606_v51  ;;  %v579_v58 = vpop.xlane.xlu2 %578  ;;  %v875_v59 = vmul.f32 %v1918_v36, %v874_v53  ;;  %v808_v35 = vand.u32 2147483648, %v1936_v48 }
 0x17e   :  { %v627_v62 = vadd.f32 %v1883_v39, %v579_v58  ;;  %vm2023_vm13 = vcmp.eq.f32.partialorder %v896_v19, 8.507059e+37  ;;  %v956_v49 = vunpack.c.h.bf16 %v2002_v27  ;;  %v972_v61 = vunpack.c.h.bf16 %v2037_v46 }
 0x17f   :  { %v1531_v23 = vpop.eup %1530  ;;  %v1433_v0 = vmul.f32 -1.442695, %v641_v56  ;;  %v1428_v1 = vmul.f32 -1.442695, %v636_v57  ;;  %v876_v18 = vadd.f32 %v1918_v36, %v875_v59  ;;  %vm802_vm9 = vweird.f32 %v1936_v48 }
 0x180   :  { %v1969_v5 = vpop.eup %1532  ;;  %v1972_v6 = vadd.f32 1.0, %v1531_v23  ;;  %v1419_v12 = vmul.f32 -1.442695, %v627_v62  ;;  %v2089_v19 = vadd.f32 %v972_v61, %v956_v49 }
 0x181   :  { %v1535_v11 = vpop.eup %1534  ;;  %1538 = vpow2.f32 %v1433_v0  ;;  %v888_v13 = vmul.f32 %v1969_v5, %v1920_v37  ;;  %vm893_vm12 = vweird.f32 %v1969_v5  ;;  %v880_v33 = vsel %vm2010_vm11, %v1918_v36, %v876_v18 }
 0x182   :  { %1540 = vrcp.f32 %v1972_v6  ;;  %v1991_v20 = vadd.f32 1.0, %v1535_v11  ;;  %v2015_v31 = vpop.eup %1536  ;;  %v911_v42 = vand.u32 2147483647, %v1972_v6  ;;  %v962_v36 = vunpack.c.h.bf16 %v1941_v52  ;;  %vm2060_vm1 = vmor %vm892_vm10, %vm893_vm12 }
 0x183   :  { %1542 = vpow2.f32 %v1428_v1  ;;  %v889_v34 = vsub.f32 1.0, %v888_v13  ;;  %vm907_vm14 = vweird.f32 %v1972_v6  ;;  %v885_v53 = vsel %vm1976_vm8, %v884_v4, %v880_v33 }
 0x184   :  { %v624_v21 = vpop.xlane.xlu0 %623  ;;  %v591_v22 = vpop.xlane.xlu1 %590  ;;  %1544 = vpow2.f32 %v1419_v12  ;;  %v978_v52 = vunpack.c.h.bf16 %v1951_v60  ;;  %v913_v56 = vand.u32 2147483648, %v1972_v6  ;;  %vm2048_vm15 = vcmp.eq.f32.partialorder %v911_v42, 8.507059e+37 }
 0x185   :  { %v642_v28 = vadd.f32 %v1883_v39, %v624_v21  ;;  %v631_v29 = vadd.f32 %v1883_v39, %v591_v22  ;;  %v890_v32 = vmul.f32 %v1969_v5, %v889_v34  ;;  %1546 = vrcp.f32 %v1991_v20 }
 0x186   :  { %v2065_v59 = vmul.f32 %v1925_v8, %v885_v53  ;;  %v2076_v9 = vadd.f32 %v978_v52, %v962_v36  ;;  %v914_v10 = vor.u32 1.1754944e-38, %v913_v56  ;;  %v798_v15 = vmul.f32 %v2015_v31, %v1936_v48 }
 0x187   :  { %v1539_v38 = vpop.eup %1538  ;;  %v1434_v14 = vmul.f32 -1.442695, %v642_v28  ;;  %v1423_v40 = vmul.f32 -1.442695, %v631_v29  ;;  %v891_v50 = vadd.f32 %v1969_v5, %v890_v32  ;;  %vm803_vm6 = vweird.f32 %v2015_v31 }
 0x188   :  { %v1541_v43 = vpop.eup %1540  ;;  %v2030_v45 = vadd.f32 1.0, %v1539_v38  ;;  %v1016_v29 = vpack.c.bf16 %v2065_v59, %v1997_v26  ;;  %v799_v49 = vsub.f32 1.0, %v798_v15 }
 0x189   :  { %v1543_v47 = vpop.eup %1542  ;;  %1548 = vpow2.f32 %v1434_v14  ;;  %v903_v51 = vmul.f32 %v1541_v43, %v1972_v6  ;;  %vm908_vm2 = vweird.f32 %v1541_v43  ;;  %v895_v1 = vsel %vm2060_vm1, %v1969_v5, %v891_v50 }
 0x18a   :  { %1550 = vrcp.f32 %v2030_v45  ;;  %v2044_v55 = vadd.f32 1.0, %v1543_v47  ;;  %v1545_v57 = vpop.eup %1544  ;;  %v926_v37 = vand.u32 2147483647, %v2030_v45  ;;  %v928_v7 = vand.u32 2147483648, %v2030_v45  ;;  %vm909_vm3 = vmor %vm907_vm14, %vm908_vm2 }
 0x18b   :  { %1552 = vpow2.f32 %v1423_v40  ;;  %v904_v58 = vsub.f32 1.0, %v903_v51  ;;  %v2054_v62 = vadd.f32 1.0, %v1545_v57  ;;  %v2072_v4 = vpop.eup %1546  ;;  %v900_v34 = vsel %vm2023_vm13, %v1995_v25, %v895_v1 }
 0x18c   :  { %1554 = vrcp.f32 %v2044_v55  ;;  %v603_v16 = vpop.xlane.xlu0 %602  ;;  %v588_v63 = vpop.xlane.xlu1 %587  ;;  %vm922_vm4 = vweird.f32 %v2030_v45  ;;  %vm2098_vm5 = vcmp.eq.f32.partialorder %v926_v37, 8.507059e+37  ;;  %v929_v6 = vor.u32 1.1754944e-38, %v928_v7 }
 0x18d   :  { %v635_v23 = vadd.f32 %v1883_v39, %v603_v16  ;;  %v630_v0 = vadd.f32 %v1883_v39, %v588_v63  ;;  %v905_v2 = vmul.f32 %v1541_v43, %v904_v58  ;;  %1556 = vrcp.f32 %v2054_v62 }
 0x18e   :  { %v2105_v38 = vmul.f32 %v1943_v3, %v900_v34  ;;  %v851_v42 = vand.u32 2147483647, %v2044_v55  ;;  %vm847_vm8 = vweird.f32 %v2044_v55  ;;  %v853_v58 = vand.u32 2147483648, %v2044_v55 }
 0x18f   :  { %v1549_v8 = vpop.eup %1548  ;;  %v1427_v11 = vmul.f32 -1.442695, %v635_v23  ;;  %v1422_v12 = vmul.f32 -1.442695, %v630_v0  ;;  %v906_v13 = vadd.f32 %v1541_v43, %v905_v2  ;;  %v800_v63 = vmul.f32 %v2015_v31, %v799_v49 }
 0x190   :  { %v1551_v18 = vpop.eup %1550  ;;  %v2081_v5 = vadd.f32 1.0, %v1549_v8  ;;  %vm2132_vm12 = vcmp.eq.f32.partialorder %v851_v42, 8.507059e+37  ;;  %v854_v8 = vor.u32 1.1754944e-38, %v853_v58  ;;  %v971_v34 = vunpack.c.l.bf16 %v2037_v46 }
 0x191   :  { %v1553_v21 = vpop.eup %1552  ;;  %1558 = vpow2.f32 %v1427_v11  ;;  %v918_v22 = vmul.f32 %v1551_v18, %v2030_v45  ;;  %v910_v28 = vsel %vm909_vm3, %v1541_v43, %v906_v13  ;;  %vm923_vm7 = vweird.f32 %v1551_v18  ;;  %v74_v11 = vld [vmem:[%s2402_s0 + $0x18] sm:$0xff]  }
 0x192   :  { %v2094_v54 = vpop.eup %1554  ;;  %1560 = vrcp.f32 %v2081_v5  ;;  %v915_v33 = vsel %vm2048_vm15, %v914_v10, %v910_v28  ;;  %v2107_v14 = vadd.f32 1.0, %v1553_v21  ;;  %v941_v47 = vand.u32 2147483647, %v2081_v5  ;;  %vm924_vm11 = vmor %vm922_vm4, %vm923_vm7 }
 0x193   :  { %1562 = vpow2.f32 %v1422_v12  ;;  %v919_v32 = vsub.f32 1.0, %v918_v22  ;;  %v843_v41 = vmul.f32 %v2094_v54, %v2044_v55  ;;  %v2115_v50 = vpop.eup %1556  ;;  %v943_v3 = vand.u32 2147483648, %v2081_v5  ;;  %vm2191_vm4 = vmor %vm802_vm9, %vm803_vm6 }
 0x194   :  { %v600_v40 = vpop.xlane.xlu0 %599  ;;  %v2119_v51 = vmul.f32 %v1985_v17, %v915_v33  ;;  %vm937_vm10 = vweird.f32 %v2081_v5  ;;  %1564 = vrcp.f32 %v2107_v14  ;;  %vm2138_vm13 = vcmp.eq.f32.partialorder %v941_v47, 8.507059e+37 }
 0x195   :  { %v634_v43 = vadd.f32 %v1883_v39, %v600_v40  ;;  %v920_v36 = vmul.f32 %v1551_v18, %v919_v32  ;;  %v844_v53 = vsub.f32 1.0, %v843_v41  ;;  %v944_v45 = vor.u32 1.1754944e-38, %v943_v3 }
 0x196   :  { %v1017_v2 = vpack.c.bf16 %v2119_v51, %v2105_v38  ;;  %vm848_vm14 = vweird.f32 %v2094_v54  ;;  %vm2155_vm15 = vcmp.eq.f32.partialorder %v806_v30, 8.507059e+37  ;;  %v801_v21 = vadd.f32 %v2015_v31, %v800_v63  ;;  %v88_v38 = vld [vmem:[%s2401_s1 + $0x10] sm:$0xff]  }
 0x197   :  { %v1559_v52 = vpop.eup %1558  ;;  %v1426_v56 = vmul.f32 -1.442695, %v634_v43  ;;  %v921_v57 = vadd.f32 %v1551_v18, %v920_v36  ;;  %v845_v17 = vmul.f32 %v2094_v54, %v844_v53  ;;  %vm2169_vm2 = vmor %vm847_vm8, %vm848_vm14  ;;  %v809_v32 = vor.u32 1.1754944e-38, %v808_v35 }
 0x198   :  { %v1561_v44 = vpop.eup %1560  ;;  %v2126_v61 = vadd.f32 1.0, %v1559_v52  ;;  %v953_v33 = vunpack.c.l.bf16 %v74_v11  ;;  %v805_v36 = vsel %vm2191_vm4, %v2015_v31, %v801_v21  ;;  %v954_v47 = vunpack.c.h.bf16 %v74_v11 }
 0x199   :  { %v1563_v60 = vpop.eup %1562  ;;  %1566 = vpow2.f32 %v1426_v56  ;;  %v925_v23 = vsel %vm924_vm11, %v1551_v18, %v921_v57  ;;  %v933_v0 = vmul.f32 %v1561_v44, %v2081_v5  ;;  %v846_v15 = vadd.f32 %v2094_v54, %v845_v17 }
 0x19a   :  { %1568 = vrcp.f32 %v2126_v61  ;;  %v2146_v37 = vadd.f32 1.0, %v1563_v60  ;;  %v930_v7 = vsel %vm2098_vm5, %v929_v6, %v925_v23  ;;  %v955_v18 = vunpack.c.l.bf16 %v2002_v27  ;;  %v2173_v6 = vpop.eup %1564 }
 0x19b   :  { %v934_v10 = vsub.f32 1.0, %v933_v0  ;;  %vm938_vm1 = vweird.f32 %v1561_v44  ;;  %v836_v25 = vand.u32 2147483647, %v2126_v61  ;;  %v1009_v27 = vmul.f32 %v1993_v24, %v930_v7  ;;  %v90_v24 = vld [vmem:[%s2401_s1 + $0x18] sm:$0xff]  }
 0x19c   :  { %v585_v13 = vpop.xlane.xlu0 %584  ;;  %v850_v46 = vsel %vm2169_vm2, %v2094_v54, %v846_v15  ;;  %1570 = vrcp.f32 %v2146_v37  ;;  %vm832_vm3 = vweird.f32 %v2126_v61  ;;  %v838_v42 = vand.u32 2147483648, %v2126_v61  ;;  %vm939_vm5 = vmor %vm937_vm10, %vm938_vm1 }
 0x19d   :  { %v629_v22 = vadd.f32 %v1883_v39, %v585_v13  ;;  %v935_v28 = vmul.f32 %v1561_v44, %v934_v10  ;;  %v987_v43 = vadd.f32 %v971_v34, %v955_v18  ;;  %vm2204_vm6 = vcmp.eq.f32.partialorder %v836_v25, 8.507059e+37 }
 0x19e   :  { %v855_v52 = vsel %vm2132_vm12, %v854_v8, %v850_v46  ;;  %v969_v56 = vunpack.c.l.bf16 %v90_v24  ;;  %v970_v57 = vunpack.c.h.bf16 %v90_v24  ;;  %v2220_v16 = vsel %vm2155_vm15, %v809_v32, %v805_v36 }
 0x19f   :  { %v1567_v40 = vpop.eup %1566  ;;  %v1421_v55 = vmul.f32 -1.442695, %v629_v22  ;;  %v936_v41 = vadd.f32 %v1561_v44, %v935_v28  ;;  %v2216_v60 = vmul.f32 %v2089_v19, %v855_v52  ;;  %v768_v23 = vmul.f32 %v2173_v6, %v2107_v14 }
 0x1a0   :  { %v1569_v54 = vpop.eup %1568  ;;  %v2195_v49 = vadd.f32 1.0, %v1567_v40  ;;  %v2228_v10 = vadd.f32 %v969_v56, %v953_v33  ;;  %v2230_v8 = vadd.f32 %v970_v57, %v954_v47  ;;  %vm772_vm8 = vweird.f32 %v2107_v14 }
 0x1a1   :  { %1572 = vpow2.f32 %v1421_v55  ;;  %v940_v3 = vsel %vm939_vm5, %v1561_v44, %v936_v41  ;;  %v828_v48 = vmul.f32 %v1569_v54, %v2126_v61  ;;  %v839_v44 = vor.u32 1.1754944e-38, %v838_v42  ;;  %v72_v55 = vld [vmem:[%s2402_s0 + $0x10] sm:$0xff]  }
 0x1a2   :  { %1574 = vrcp.f32 %v2195_v49  ;;  %v945_v5 = vsel %vm2138_vm13, %v944_v45, %v940_v3  ;;  %v823_v17 = vand.u32 2147483648, %v2195_v49  ;;  %vm833_vm7 = vweird.f32 %v1569_v54  ;;  %v2224_v0 = vpop.eup %1570 }
 0x1a3   :  { %v1010_v31 = vmul.f32 %v2076_v9, %v945_v5  ;;  %v829_v58 = vsub.f32 1.0, %v828_v48  ;;  %v821_v7 = vand.u32 2147483647, %v2195_v49  ;;  %v769_v19 = vsub.f32 1.0, %v768_v23  ;;  %vm834_vm10 = vmor %vm832_vm3, %vm833_vm7  ;;  %v86_v23 = vld [vmem:[%s2401_s1 + $0x8] sm:$0xff]  }
 0x1a4   :  { %v582_v63 = vpop.xlane.xlu0 %581  ;;  %vm817_vm9 = vweird.f32 %v2195_v49  ;;  %v824_v15 = vor.u32 1.1754944e-38, %v823_v17  ;;  %vm773_vm11 = vweird.f32 %v2173_v6  ;;  %v776_v22 = vand.u32 2147483647, %v2107_v14 }
 0x1a5   :  { %v628_v9 = vadd.f32 %v1883_v39, %v582_v63  ;;  %v1018_v1 = vpack.c.bf16 %v1010_v31, %v1009_v27  ;;  %v830_v45 = vmul.f32 %v1569_v54, %v829_v58  ;;  %v783_v39 = vmul.f32 %v2072_v4, %v1991_v20  ;;  %vm2264_vm13 = vmor %vm772_vm8, %vm773_vm11 }
 0x1a6   :  { %v770_v21 = vmul.f32 %v2173_v6, %v769_v19  ;;  %vm2245_vm12 = vcmp.eq.f32.partialorder %v821_v7, 8.507059e+37  ;;  %v778_v27 = vand.u32 2147483648, %v2107_v14  ;;  %vm787_vm14 = vweird.f32 %v1991_v20 }
 0x1a7   :  { %v1573_v11 = vpop.eup %1572  ;;  %v1420_v12 = vmul.f32 -1.442695, %v628_v9  ;;  %1038 = vmatpush.bf16.msra.mxu3 %v1018_v1  ;;  %v831_v13 = vadd.f32 %v1569_v54, %v830_v45  ;;  %v784_v32 = vsub.f32 1.0, %v783_v39  ;;  %vm788_vm15 = vweird.f32 %v2072_v4 }
 0x1a8   :  { %v1575_v18 = vpop.eup %1574  ;;  %v2236_v34 = vadd.f32 1.0, %v1573_v11  ;;  %v771_v46 = vadd.f32 %v2173_v6, %v770_v21  ;;  %v793_v14 = vand.u32 2147483648, %v1991_v20  ;;  %v951_v42 = vunpack.c.l.bf16 %v72_v55  ;;  %vm789_vm3 = vmor %vm787_vm14, %vm788_vm15 }
 0x1a9   :  { %1576 = vpow2.f32 %v1420_v12  ;;  %v835_v28 = vsel %vm834_vm10, %v1569_v54, %v831_v13  ;;  %v813_v25 = vmul.f32 %v1575_v18, %v2195_v49  ;;  %vm818_vm1 = vweird.f32 %v1575_v18 }
 0x1aa   :  { %1578 = vrcp.f32 %v2236_v34  ;;  %v840_v61 = vsel %vm2204_vm6, %v839_v44, %v835_v28  ;;  %v775_v51 = vsel %vm2264_vm13, %v2173_v6, %v771_v46  ;;  %v779_v35 = vor.u32 1.1754944e-38, %v778_v27  ;;  %vm819_vm4 = vmor %vm817_vm9, %vm818_vm1 }
 0x1ab   :  { %1039 = vmatpush.bf16.msra.mxu3 %v1017_v2  ;;  %v1003_v33 = vmul.f32 %v987_v43, %v840_v61  ;;  %v814_v40 = vsub.f32 1.0, %v813_v25  ;;  %v785_v2 = vmul.f32 %v2072_v4, %v784_v32  ;;  %v791_v54 = vand.u32 2147483647, %v1991_v20 }
 0x1ac   :  { %vm777_vm2 = vcmp.eq.f32.partialorder %v776_v22, 8.507059e+37  ;;  %v952_v36 = vunpack.c.h.bf16 %v72_v55  ;;  %v967_v47 = vunpack.c.l.bf16 %v88_v38  ;;  %v968_v52 = vunpack.c.h.bf16 %v88_v38  ;;  %v68_v38 = vld [vmem:[%s2402_s0] sm:$0xff]  }
 0x1ad   :  { %v815_v24 = vmul.f32 %v1575_v18, %v814_v40  ;;  %v786_v43 = vadd.f32 %v2072_v4, %v785_v2  ;;  %v1015_v6 = vpack.c.bf16 %v2216_v60, %v1003_v33  ;;  %v780_v53 = vsel %vm777_vm2, %v779_v35, %v775_v51  ;;  %v84_v51 = vld [vmem:[%s2401_s1] sm:$0xff]  }
 0x1ae   :  { %v794_v59 = vor.u32 1.1754944e-38, %v793_v14  ;;  %vm792_vm5 = vcmp.eq.f32.partialorder %v791_v54, 8.507059e+37  ;;  %v984_v31 = vadd.f32 %v968_v52, %v952_v36  ;;  %v1001_v44 = vmul.f32 %v2228_v10, %v2220_v16 }
 0x1af   :  { %v1577_v3 = vpop.eup %1576  ;;  %1040 = vmatpush.bf16.msra.mxu3 %v1016_v29  ;;  %v816_v48 = vadd.f32 %v1575_v18, %v815_v24  ;;  %v790_v26 = vsel %vm789_vm3, %v2072_v4, %v786_v43  ;;  %v983_v29 = vadd.f32 %v967_v47, %v951_v42  ;;  %v70_v4 = vld [vmem:[%s2402_s0 + $0x8] sm:$0xff]   ;;  %vm742_vm6 = vweird.f32 %v2236_v34 }
 0x1b0   :  { %v1579_v5 = vpop.eup %1578  ;;  %v2288_v56 = vadd.f32 1.0, %v1577_v3  ;;  %v795_v17 = vsel %vm792_vm5, %v794_v59, %v790_v26  ;;  %v746_v16 = vand.u32 2147483647, %v2236_v34  ;;  %v748_v9 = vand.u32 2147483648, %v2236_v34 }
 0x1b1   :  { %v820_v57 = vsel %vm819_vm4, %v1575_v18, %v816_v48  ;;  %v738_v58 = vmul.f32 %v1579_v5, %v2236_v34  ;;  %v999_v60 = vmul.f32 %v983_v29, %v780_v53  ;;  %v753_v1 = vmul.f32 %v2224_v0, %v2146_v37 }
 0x1b2   :  { %v825_v20 = vsel %vm2245_vm12, %v824_v15, %v820_v57  ;;  %1580 = vrcp.f32 %v2288_v56  ;;  %v1000_v7 = vmul.f32 %v984_v31, %v795_v17  ;;  %vm743_vm7 = vweird.f32 %v1579_v5  ;;  %v1515_v57 = vld [vmem:[%s2406_s3] ss:$0 sm:$0xff] }
 0x1b3   :  { %1041 = vmatpush.bf16.msra.mxu3 %v1015_v6  ;;  %v1002_v49 = vmul.f32 %v2230_v8, %v825_v20  ;;  %v739_v63 = vsub.f32 1.0, %v738_v58  ;;  %v754_v8 = vsub.f32 1.0, %v753_v1  ;;  %v761_v19 = vand.u32 2147483647, %v2146_v37  ;;  %vm744_vm8 = vmor %vm742_vm6, %vm743_vm7 }
 0x1b4   :  { %v949_v11 = vunpack.c.l.bf16 %v70_v4  ;;  %v950_v12 = vunpack.c.h.bf16 %v70_v4  ;;  %v763_v15 = vand.u32 2147483648, %v2146_v37  ;;  %v965_v39 = vunpack.c.l.bf16 %v86_v23 }
 0x1b5   :  { %v1014_v45 = vpack.c.bf16 %v1002_v49, %v1001_v44  ;;  %v740_v10 = vmul.f32 %v1579_v5, %v739_v63  ;;  %v966_v18 = vunpack.c.h.bf16 %v86_v23  ;;  %vm747_vm9 = vcmp.eq.f32.partialorder %v746_v16, 8.507059e+37  ;;  %v1027_v44 = vpop.permute.xlu2 %1026  ;;  %v1499_v23 = vld [vmem:[%s2408_s11 + $0x8] sm:$0xff]  ;;  %v1498_v16 = vld [vmem:[%s2408_s11] sm:$0xff] }
 0x1b6   :  { %v749_v21 = vor.u32 1.1754944e-38, %v748_v9  ;;  %v755_v22 = vmul.f32 %v2224_v0, %v754_v8  ;;  %vm758_vm10 = vweird.f32 %v2224_v0  ;;  %v1013_v25 = vpack.c.bf16 %v1000_v7, %v999_v60  ;;  %v1501_v9 = vld [vmem:[%s2409_s12 + $0x8] sm:$0xff] }
 0x1b7   :  { %1042 = vmatpush.bf16.msra.mxu3 %v1014_v45  ;;  %v741_v13 = vadd.f32 %v1579_v5, %v740_v10  ;;  %v981_v27 = vadd.f32 %v965_v39, %v949_v11  ;;  %v708_v61 = vmul.f32 %v2115_v50, %v2054_v62  ;;  %vm757_vm11 = vweird.f32 %v2146_v37  ;;  %v1503_v39 = vld [vmem:[%s2411_s13 + $0x8] sm:$0xff] }
 0x1b8   :  { %v1581_v28 = vpop.eup %1580  ;;  %v756_v32 = vadd.f32 %v2224_v0, %v755_v22  ;;  %v982_v34 = vadd.f32 %v966_v18, %v950_v12  ;;  %vm759_vm12 = vmor %vm757_vm11, %vm758_vm10  ;;  %vm762_vm13 = vcmp.eq.f32.partialorder %v761_v19, 8.507059e+37  ;;  %v764_v33 = vor.u32 1.1754944e-38, %v763_v15  ;;  %v1500_v15 = vld [vmem:[%s2409_s12] sm:$0xff] }
 0x1b9   :  { %v745_v30 = vsel %vm744_vm8, %v1579_v5, %v741_v13  ;;  %v709_v40 = vsub.f32 1.0, %v708_v61  ;;  %vm712_vm14 = vweird.f32 %v2054_v62  ;;  %v723_v37 = vmul.f32 %v1581_v28, %v2288_v56  ;;  %v1502_v18 = vld [vmem:[%s2411_s13] sm:$0xff]  ;;  %v2375_v61 = vld [vmem:[%s2412_s4 + $0x8] sm:$0xff] }
 0x1ba   :  { %v750_v46 = vsel %vm747_vm9, %v749_v21, %v745_v30  ;;  %v760_v55 = vsel %vm759_vm12, %v2224_v0, %v756_v32  ;;  %vm713_vm15 = vweird.f32 %v2115_v50  ;;  %v718_v0 = vand.u32 2147483648, %v2054_v62 }
 0x1bb   :  { %1043 = vmatpush.bf16.msra.mxu3 %v1013_v25  ;;  %v997_v41 = vmul.f32 %v981_v27, %v750_v46  ;;  %v765_v2 = vsel %vm762_vm13, %v764_v33, %v760_v55  ;;  %v710_v14 = vmul.f32 %v2115_v50, %v709_v40  ;;  %v716_v24 = vand.u32 2147483647, %v2054_v62  ;;  %vm714_vm1 = vmor %vm712_vm14, %vm713_vm15  ;;  %v1097_v27 = vld [vmem:[%s2412_s4] sm:$0xff] }
 0x1bc   :  { %v998_v42 = vmul.f32 %v982_v34, %v765_v2  ;;  %v724_v35 = vsub.f32 1.0, %v723_v37  ;;  %v733_v54 = vand.u32 2147483648, %v2288_v56  ;;  %v947_v36 = vunpack.c.l.bf16 %v68_v38  ;;  %v1517_v33 = vld [vmem:[%s2413_s15] ss:$0 sm:$0xff]  ;;  %s1599_s15 = smov 96  }
 0x1bd   :  { %v711_v43 = vadd.f32 %v2115_v50, %v710_v14  ;;  %v948_v47 = vunpack.c.h.bf16 %v68_v38  ;;  %v963_v3 = vunpack.c.l.bf16 %v84_v51  ;;  %vm728_vm2 = vweird.f32 %v1581_v28 }
 0x1be   :  { %v1012_v6 = vpack.c.bf16 %v998_v42, %v997_v41  ;;  %v725_v48 = vmul.f32 %v1581_v28, %v724_v35  ;;  %v731_v53 = vand.u32 2147483647, %v2288_v56  ;;  %v719_v5 = vor.u32 1.1754944e-38, %v718_v0 }
 0x1bf   :  { %v715_v52 = vsel %vm714_vm1, %v2115_v50, %v711_v43  ;;  %vm727_vm3 = vweird.f32 %v2288_v56  ;;  %v964_v26 = vunpack.c.h.bf16 %v84_v51  ;;  %vm717_vm4 = vcmp.eq.f32.partialorder %v716_v24, 8.507059e+37  ;;  %v1024_v50 = vpop.permute.xlu1 %1023  ;;  %v1516_v51 = vld [vmem:[%s2410_s14] ss:$0 sm:$0xff]  ;;  %s1598_s14 = smov 32  }
 0x1c0   :  { %1044 = vmatpush.bf16.msra.mxu3 %v1012_v6  ;;  %v726_v59 = vadd.f32 %v1581_v28, %v725_v48  ;;  %v979_v29 = vadd.f32 %v963_v3, %v947_v36  ;;  %v720_v62 = vsel %vm717_vm4, %v719_v5, %v715_v52  ;;  %vm729_vm5 = vmor %vm727_vm3, %vm728_vm2  ;;  %v734_v31 = vor.u32 1.1754944e-38, %v733_v54 }
 0x1c1   :  { %v980_v58 = vadd.f32 %v964_v26, %v948_v47  ;;  %v1595_v20 = vmov 0.0   ;;  %vm732_vm6 = vcmp.eq.f32.partialorder %v731_v53, 8.507059e+37  ;;  %vm1029_vm7 = vcmp.eq.s32.totalorder %v1024_v50, %v1515_v57 }
 0x1c2   :  { %60 = vst.msk [vmem:[#allocation2] sm:$0xff] %vm59_vm0, %v1595_v20  ;;  %v730_v17 = vsel %vm729_vm5, %v1581_v28, %v726_v59  ;;  %v995_v49 = vmul.f32 %v979_v29, %v720_v62  ;;  %vm1030_vm8 = vcmp.eq.s32.totalorder %v1027_v44, %v1515_v57  ;;  %v1596_v60 = vmov 1.0|1.0  }
 0x1c3   :  { %61 = vst.msk [vmem:[#allocation2 + $0x8] sm:$0xff] %vm59_vm0, %v1595_v20  ;;  %v735_v56 = vsel %vm732_vm6, %v734_v31, %v730_v17  ;;  %vm1437_vm9 = vmpackc.low %vm1030_vm8, %vm1029_vm7  ;;  %v1137_v46 = vpack.c.bf16 %v2375_v61, %v1097_v27 }
 0x1c4   :  { %v996_v4 = vmul.f32 %v980_v58, %v735_v56 }
 0x1c6   :  { %v1011_v63 = vpack.c.bf16 %v996_v4, %v995_v49 }
 0x1c8   :  { %1045 = vmatpush.bf16.msra.mxu3 %v1011_v63 }
 0x1c9   :  { %v1036_v1 = vld [vmem:[#allocation2] sm:$0xff] }
 0x1ca   :  { %v1037_v10 = vld [vmem:[#allocation2 + $0x8] sm:$0xff] }
 0x1cb   :  { %1438 = vmatmul.msk.bf16.vlgmr.msra.gmra.mxu3 %vm1437_vm9, %v1596_v60 }
 0x1cc   :  { %1087 = vmatpush.bf16.msrb.mxu3 %v1499_v23 }
 0x1d0   :  { %1088 = vmatpush.bf16.msrb.mxu3 %v1498_v16 }
 0x1d4   :  { %1129 = vmatpush.bf16.msra.mxu3 %v1501_v9 }
 0x1d8   :  { %1130 = vmatpush.bf16.msra.mxu3 %v1500_v15 }
 0x24e   :  { %v1047_v45 = vpop.f32.mrf.mxu3 }
 0x24f   :  { %v1052_v7 = vadd.f32 %v1047_v45, %v1036_v1 }
 0x251   :  { %1054 = vst.msk [vmem:[#allocation2] sm:$0xff] %vm59_vm0, %v1052_v7 }
 0x256   :  { %v1049_v8 = vpop.f32.mrf.mxu3 }
 0x257   :  { %v1053_v19 = vadd.f32 %v1049_v8, %v1037_v10 }
 0x258   :  { %v1059_v11 = vld [vmem:[#allocation2] sm:$0xff] }
 0x259   :  { %1055 = vst.msk [vmem:[#allocation2 + $0x8] sm:$0xff] %vm59_vm0, %v1053_v19 }
 0x260   :  { %v1060_v12 = vld [vmem:[#allocation2 + $0x8] sm:$0xff] }
 0x261   :  { %v1061_v13 = vpack.c.bf16 %v1060_v12, %v1059_v11 }
 0x263   :  { %1447 = vmatmul.msk.bf16.vlgmr.msrb.gmra.mxu3 %vm59_vm0, %v1061_v13 }
 0x264   :  { %1167 = vmatpush.bf16.msrb.mxu3 %v1503_v39 }
 0x268   :  { %1168 = vmatpush.bf16.msrb.mxu3 %v1502_v18 }
 0x2e6   :  { %v1090_v21 = vpop.f32.mrf.mxu3 }
 0x2e7   :  { %v1095_v28 = vmax.f32 %v1090_v21, 0.0 }
 0x2ee   :  { %v1092_v22 = vpop.f32.mrf.mxu3 }
 0x2ef   :  { %v1096_v25 = vmax.f32 %v1092_v22, 0.0 }
 0x2f1   :  { %v1099_v30 = vpack.c.bf16 %v1096_v25, %v1095_v28 }
 0x2f3   :  { %1456 = vmatmul.msk.bf16.vlgmr.msra.gmra.mxu3 %vm59_vm0, %v1099_v30 }
 0x303   :  { %1465 = vmatmul.msk.bf16.vlgmr.msrb.gmra.mxu3 %vm59_vm0, %v1137_v46 }
 0x376   :  { %v1132_v32 = vpop.f32.mrf.mxu3 }
 0x377   :  { %v1133_v42 = vadd.f32 %v1516_v51, %v1132_v32 }
 0x37e   :  { %v1134_v34 = vpop.f32.mrf.mxu3 }
 0x37f   :  { %v1135_v37 = vadd.f32 %v1516_v51, %v1134_v34 }
 0x386   :  { %v1170_v40 = vpop.f32.mrf.mxu3 }
 0x387   :  { %v1171_v55 = vadd.f32 %v1517_v33, %v1170_v40 }
 0x389   :  { %1217 = vrot.lane.b32.xlu0 %v1171_v55, %s1597_s22  ;;  %v1175_v24 = vadd.f32 %v1171_v55, %v1133_v42 }
 0x38b   :  { %v1466_v54 = vmul.f32 -1.442695, %v1175_v24 }
 0x38e   :  { %v1172_v41 = vpop.f32.mrf.mxu3 }
 0x38f   :  { %v1173_v38 = vadd.f32 %v1517_v33, %v1172_v41 }
 0x391   :  { %1219 = vrot.lane.b32.xlu2 %v1173_v38, %s1597_s22  ;;  %v1176_v2 = vadd.f32 %v1173_v38, %v1135_v37 }
 0x393   :  { %v1467_v14 = vmul.f32 -1.442695, %v1176_v2 }
 0x395   :  { %1582 = vpow2.f32 %v1467_v14 }
 0x39b   :  { %v1583_v0 = vpop.eup %1582 }
 0x39c   :  { %v1184_v35 = vadd.f32 1.0, %v1583_v0 }
 0x39e   :  { %1584 = vrcp.f32 %v1184_v35  ;;  %v1211_v5 = vand.u32 2147483648, %v1184_v35  ;;  %vm1205_vm11 = vweird.f32 %v1184_v35  ;;  %v1209_v26 = vand.u32 2147483647, %v1184_v35 }
 0x39f   :  { %1586 = vpow2.f32 %v1466_v54 }
 0x3a0   :  { %v1212_v57 = vor.u32 1.1754944e-38, %v1211_v5  ;;  %vm1210_vm13 = vcmp.eq.f32.partialorder %v1209_v26, 8.507059e+37 }
 0x3a4   :  { %v1585_v43 = vpop.eup %1584 }
 0x3a5   :  { %v1587_v36 = vpop.eup %1586  ;;  %v1201_v47 = vmul.f32 %v1585_v43, %v1184_v35  ;;  %vm1206_vm10 = vweird.f32 %v1585_v43 }
 0x3a6   :  { %v1183_v3 = vadd.f32 1.0, %v1587_v36  ;;  %vm1207_vm12 = vmor %vm1205_vm11, %vm1206_vm10 }
 0x3a7   :  { %v1202_v6 = vsub.f32 1.0, %v1201_v47 }
 0x3a8   :  { %1588 = vrcp.f32 %v1183_v3  ;;  %v1196_v17 = vand.u32 2147483648, %v1183_v3  ;;  %vm1190_vm15 = vweird.f32 %v1183_v3  ;;  %v1194_v56 = vand.u32 2147483647, %v1183_v3 }
 0x3a9   :  { %v1203_v48 = vmul.f32 %v1585_v43, %v1202_v6 }
 0x3aa   :  { %v1197_v4 = vor.u32 1.1754944e-38, %v1196_v17  ;;  %vm1195_vm2 = vcmp.eq.f32.partialorder %v1194_v56, 8.507059e+37 }
 0x3ab   :  { %v1204_v53 = vadd.f32 %v1585_v43, %v1203_v48 }
 0x3ad   :  { %v1208_v59 = vsel %vm1207_vm12, %v1585_v43, %v1204_v53 }
 0x3ae   :  { %v1589_v52 = vpop.eup %1588  ;;  %v1213_v31 = vsel %vm1210_vm13, %v1212_v57, %v1208_v59 }
 0x3af   :  { %v1186_v29 = vmul.f32 %v1589_v52, %v1183_v3  ;;  %vm1191_vm14 = vweird.f32 %v1589_v52  ;;  %v1238_v39 = vsub.f32 1.0, %v1213_v31 }
 0x3b0   :  { %vm1192_vm1 = vmor %vm1190_vm15, %vm1191_vm14 }
 0x3b1   :  { %v1187_v20 = vsub.f32 1.0, %v1186_v29 }
 0x3b3   :  { %v1188_v50 = vmul.f32 %v1589_v52, %v1187_v20 }
 0x3b5   :  { %v1189_v44 = vadd.f32 %v1589_v52, %v1188_v50 }
 0x3b7   :  { %v1193_v49 = vsel %vm1192_vm1, %v1589_v52, %v1189_v44 }
 0x3b8   :  { %v1198_v60 = vsel %vm1195_vm2, %v1197_v4, %v1193_v49 }
 0x3b9   :  { %v1237_v19 = vsub.f32 1.0, %v1198_v60 }
 0x3eb   :  { %v1220_v62 = vpop.permute.xlu2 %1219 }
 0x3ec   :  { %v1224_v58 = vmul.f32 %v1220_v62, %v1213_v31 }
 0x3ee   :  { %1229 = vrot.lane.b32.xlu0 %v1224_v58, %s1597_s22 }
 0x3f6   :  { %1251 = vrot.lane.b32.xlu0 %v1097_v27, %s1598_s14 }
 0x3fb   :  { %v1218_v63 = vpop.permute.xlu0 %1217 }
 0x3fc   :  { %v1223_v23 = vmul.f32 %v1218_v63, %v1198_v60 }
 0x3fe   :  { %1227 = vrot.lane.b32.xlu1 %v1223_v23, %s1597_s22 }
 0x460   :  { %v1230_v16 = vpop.permute.xlu0 %1229 }
 0x461   :  { %v1234_v9 = vadd.f32 %v1230_v16, %v1135_v37 }
 0x463   :  { %1590 = vtanh.f32 %v1234_v9 }
 0x468   :  { %v1252_v8 = vpop.permute.xlu0 %1251 }
 0x469   :  { %v1591_v1 = vpop.eup %1590  ;;  %v1257_v12 = vmul.f32 %v1252_v8, %v1198_v60 }
 0x46a   :  { %1243 = vrot.lane.b32.xlu1 %v1591_v1, %s1599_s15 }
 0x470   :  { %v1228_v45 = vpop.permute.xlu1 %1227 }
 0x471   :  { %v1233_v7 = vadd.f32 %v1228_v45, %v1133_v42 }
 0x473   :  { %1592 = vtanh.f32 %v1233_v7 }
 0x479   :  { %v1593_v10 = vpop.eup %1592 }
 0x47a   :  { %1241 = vrot.lane.b32.xlu2 %v1593_v10, %s1599_s15 }
 0x482   :  { %1253 = vrot.lane.b32.xlu2 %v2375_v61, %s1598_s14 }
 0x4d4   :  { %v1242_v11 = vpop.permute.xlu2 %1241 }
 0x4d5   :  { %v1247_v13 = vmul.f32 %v1242_v11, %v1237_v19 }
 0x4d7   :  { %v1259_v15 = vadd.f32 %v1257_v12, %v1247_v13 }
 0x4d9   :  { %1263 = vrot.lane.b32.xlu1 %v1259_v15, %s1599_s15 }
 0x4dc   :  { %v1254_v18 = vpop.permute.xlu2 %1253  ;;  %v1244_v21 = vpop.permute.xlu1 %1243 }
 0x4dd   :  { %v1258_v22 = vmul.f32 %v1254_v18, %v1213_v31  ;;  %v1248_v28 = vmul.f32 %v1244_v21, %v1238_v39 }
 0x4df   :  { %v1260_v25 = vadd.f32 %v1258_v22, %v1248_v28 }
 0x4e1   :  { %1265 = vrot.lane.b32.xlu0 %v1260_v25, %s1599_s15 }
 0x54b   :  { %v1264_v30 = vpop.permute.xlu1 %1263 }
 0x54c   :  { %1269 = vst.msk [vmem:[%s2414_s16] sm:$0xff] %vm59_vm0, %v1264_v30 }
 0x553   :  { %v1266_v27 = vpop.permute.xlu0 %1265 }
 0x554   :  { %1270 = vst.msk [vmem:[%s2414_s16 + $0x8] sm:$0xff] %vm59_vm0, %v1266_v27 }

</bundles_post_ra>
